<compile_context>
chip_gen: v7x
topology: tpu7x:2x2x1
jax: 0.10.0
libtpu: 0.0.40
codegen_flags: <defaults>
</compile_context>

<pallas_src>
import functools
import math

import jax
import jax.numpy as jnp
from jax.experimental import pallas as pl
from jax.experimental.pallas import tpu as pltpu


# ----------------------------------------------------------------------------
# In-kernel helpers
# ----------------------------------------------------------------------------
def _layer_norm(x, w, b, eps=1e-5):
    # x: (rows, D) f32, w/b: (1, D) f32
    mu = jnp.mean(x, axis=-1, keepdims=True)
    var = jnp.mean(jnp.square(x - mu), axis=-1, keepdims=True)
    return (x - mu) * jax.lax.rsqrt(var + eps) * w + b


# ----------------------------------------------------------------------------
# Fused kernel: embedding (layer 0) + encoder layer + final cls LayerNorm
# grid = (row_tiles [parallel], num_layers [arbitrary])
# ----------------------------------------------------------------------------
def fused_transformer_kernel(
        patches_ref,            # (1, R, P)   bf16  (cls rows are zeros)
        wpe_ref,                # (P, D)      bf16
        add_ref,                # (1, R, D)   f32   (cls+pos / conv_bias+pos)
        mask_ref,               # (R, R)      f32   (0 same sequence, -1e30 else)
        wqkv_ref, bqkv_ref,     # (1, D, 3D) bf16 / (1, 1, 3D) f32  (q-scaled)
        wo_ref, bo_ref,         # (1, D, D)  bf16 / (1, 1, D)  f32
        ln1w_ref, ln1b_ref,     # (1, 1, D) f32
        w1_ref, b1_ref,         # (1, D, F)  bf16 / (1, 1, F)  f32
        w2_ref, b2_ref,         # (1, F, D)  bf16 / (1, 1, D)  f32
        ln2w_ref, ln2b_ref,     # (1, 1, D) f32
        encw_ref, encb_ref,     # (1, D) f32
        out_ref,                # (1, Bt, D) f32
        acc_ref,                # VMEM scratch (R, D) f32
        *, nhead, n_cls):
    layer = pl.program_id(1)

    # ---- layer-0 prologue: patch embedding as one matmul, no concatenate ----
    @pl.when(layer == 0)
    def _():
        emb = jnp.dot(patches_ref[0], wpe_ref[...],
                      preferred_element_type=jnp.float32)      # (R, D)
        acc_ref[...] = emb + add_ref[0]

    x = acc_ref[...]                                           # (R, D) f32
    D = x.shape[-1]
    hd = D // nhead

    # ---- multi-head self-attention (scale folded into wqkv/bqkv) -----------
    qkv = jnp.dot(x.astype(jnp.bfloat16), wqkv_ref[0],
                  preferred_element_type=jnp.float32) + bqkv_ref[0]  # (R, 3D)
    q = qkv[:, 0:D]
    k = qkv[:, D:2 * D]
    v = qkv[:, 2 * D:3 * D]

    mask = mask_ref[...]                                       # (R, R)
    ctx = []
    for h in range(nhead):
        sl = slice(h * hd, (h + 1) * hd)
        # whole-slab scores; cross-sequence pairs are masked to -1e30
        s = jax.lax.dot_general(q[:, sl], k[:, sl], (((1,), (1,)), ((), ())),
                                preferred_element_type=jnp.float32)  # (R, R)
        s = s + mask
        s = s - jnp.max(s, axis=-1, keepdims=True)
        p = jnp.exp(s)
        p = p * pl.reciprocal(jnp.sum(p, axis=-1, keepdims=True), approx=True)
        ctx.append(jnp.dot(p, v[:, sl],
                           preferred_element_type=jnp.float32))      # (R, hd)
    ctx = jnp.concatenate(ctx, axis=-1)                        # (R, D)
    attn = jnp.dot(ctx.astype(jnp.bfloat16), wo_ref[0],
                   preferred_element_type=jnp.float32) + bo_ref[0]

    y = _layer_norm(x + attn, ln1w_ref[0], ln1b_ref[0])

    # ---- FFN (relu) ---------------------------------------------------------
    h1 = jnp.dot(y.astype(jnp.bfloat16), w1_ref[0],
                 preferred_element_type=jnp.float32) + b1_ref[0]
    h1 = jnp.maximum(h1, 0.0)
    h2 = jnp.dot(h1.astype(jnp.bfloat16), w2_ref[0],
                 preferred_element_type=jnp.float32) + b2_ref[0]
    z = _layer_norm(y + h2, ln2w_ref[0], ln2b_ref[0])
    acc_ref[...] = z

    # ---- final step: encoder LayerNorm on the cls rows only -----------------
    @pl.when(layer == pl.num_programs(1) - 1)
    def _():
        cls = z[0:n_cls, :]        # position-major layout: first Bt rows = cls
        out_ref[0] = _layer_norm(cls, encw_ref[...],
                                 encb_ref[...]).astype(out_ref.dtype)


# ----------------------------------------------------------------------------
# Full forward (glue does only layout work + weight stacking/casting)
# ----------------------------------------------------------------------------
def temporal_transformer_forward(x, params, *, patch_size_t, nhead,
                                 n_row_tiles=None):
    bs, _, T, C = x.shape
    D = T                                   # d_model = n_timepoints
    P = patch_size_t
    NP = T // P
    S = NP + 1
    F = 3 * D
    B = bs * C
    L = len(params["layers"])
    NT = n_row_tiles if n_row_tiles is not None else (2 if B % 2 == 0 else 1)
    assert B % NT == 0 and D % nhead == 0 and T % P == 0
    Bt = B // NT                            # sequences per row tile
    R = S * Bt                              # rows per tile (position-major)

    # --- temporal patch extraction, sequence order b = bs_idx * C + c --------
    patches = (x[:, 0]                       # (bs, T, C)
               .reshape(bs, NP, P, C)
               .transpose(0, 3, 1, 2)        # (bs, C, NP, P)
               .reshape(B, NP, P))
    # position-major slab per row tile: row = s*Bt + b_local, s = 0 is cls slot
    pe = patches.reshape(NT, Bt, NP, P).transpose(0, 2, 1, 3)   # (NT, NP, Bt, P)
    pe = jnp.concatenate([jnp.zeros((NT, 1, Bt, P), pe.dtype), pe], axis=1)
    patches_pm = pe.reshape(NT, R, P).astype(jnp.bfloat16)

    # additive term per token: cls+pos[0] at s==0, conv_bias+pos[s] at s>=1
    add_seq = jnp.concatenate([params["cls"] + params["pos"][0:1],
                               params["b_pe"] + params["pos"][1:]], axis=0)
    add_pm = jnp.tile(add_seq[:, None, :], (1, Bt, 1)).reshape(R, D)
    add_pm = jnp.tile(add_pm[None], (NT, 1, 1)).astype(jnp.float32)

    # block mask: rows i, j belong to the same sequence iff i % Bt == j % Bt
    rows = jnp.arange(R, dtype=jnp.int32)
    same_seq = (rows[:, None] % Bt) == (rows[None, :] % Bt)
    attn_mask = jnp.where(same_seq, 0.0, -1e30).astype(jnp.float32)

    # --- stack per-layer weights (leading L axis), fold softmax scale into q,
    #     cast big matmul weights to bf16 (f32 accumulation in-kernel) --------
    def stack(name):
        return jnp.stack([lp[name] for lp in params["layers"]])

    scale = 1.0 / math.sqrt(D // nhead)
    qmul = jnp.concatenate([jnp.full((D,), scale, jnp.float32),
                            jnp.ones((2 * D,), jnp.float32)])
    wqkv = (stack("wqkv_t") * qmul).astype(jnp.bfloat16)        # (L, D, 3D)
    bqkv = stack("bqkv") * qmul                                 # (L, 1, 3D)
    wo = stack("wo_t").astype(jnp.bfloat16)                     # (L, D, D)
    bo = stack("bo")
    ln1w, ln1b = stack("ln1w"), stack("ln1b")
    w1 = stack("w1_t").astype(jnp.bfloat16)                     # (L, D, F)
    b1 = stack("b1")
    w2 = stack("w2_t").astype(jnp.bfloat16)                     # (L, F, D)
    b2 = stack("b2")
    ln2w, ln2b = stack("ln2w"), stack("ln2b")
    w_pe = params["w_pe"].astype(jnp.bfloat16)                  # (P, D)

    kern = functools.partial(fused_transformer_kernel, nhead=nhead, n_cls=Bt)
    cls_out = pl.pallas_call(
        kern,
        out_shape=jax.ShapeDtypeStruct((NT, Bt, D), jnp.float32),
        grid=(NT, L),
        in_specs=[
            pl.BlockSpec((1, R, P), lambda rt, l: (rt, 0, 0)),   # patches
            pl.BlockSpec((P, D), lambda rt, l: (0, 0)),          # w_pe
            pl.BlockSpec((1, R, D), lambda rt, l: (rt, 0, 0)),   # add
            pl.BlockSpec((R, R), lambda rt, l: (0, 0)),          # attn mask
            pl.BlockSpec((1, D, 3 * D), lambda rt, l: (l, 0, 0)),  # wqkv
            pl.BlockSpec((1, 1, 3 * D), lambda rt, l: (l, 0, 0)),  # bqkv
            pl.BlockSpec((1, D, D), lambda rt, l: (l, 0, 0)),    # wo
            pl.BlockSpec((1, 1, D), lambda rt, l: (l, 0, 0)),    # bo
            pl.BlockSpec((1, 1, D), lambda rt, l: (l, 0, 0)),    # ln1w
            pl.BlockSpec((1, 1, D), lambda rt, l: (l, 0, 0)),    # ln1b
            pl.BlockSpec((1, D, F), lambda rt, l: (l, 0, 0)),    # w1
            pl.BlockSpec((1, 1, F), lambda rt, l: (l, 0, 0)),    # b1
            pl.BlockSpec((1, F, D), lambda rt, l: (l, 0, 0)),    # w2
            pl.BlockSpec((1, 1, D), lambda rt, l: (l, 0, 0)),    # b2
            pl.BlockSpec((1, 1, D), lambda rt, l: (l, 0, 0)),    # ln2w
            pl.BlockSpec((1, 1, D), lambda rt, l: (l, 0, 0)),    # ln2b
            pl.BlockSpec((1, D), lambda rt, l: (0, 0)),          # enc_norm_w
            pl.BlockSpec((1, D), lambda rt, l: (0, 0)),          # enc_norm_b
        ],
        out_specs=pl.BlockSpec((1, Bt, D), lambda rt, l: (rt, 0, 0)),
        scratch_shapes=[pltpu.VMEM((R, D), jnp.float32)],
        compiler_params=pltpu.CompilerParams(
            dimension_semantics=("parallel", "arbitrary"),
            vmem_limit_bytes=32 * 1024 * 1024),
    )(patches_pm, w_pe, add_pm, attn_mask,
      wqkv, bqkv, wo, bo, ln1w, ln1b, w1, b1, w2, b2, ln2w, ln2b,
      params["enc_norm_w"], params["enc_norm_b"])

    # (NT, Bt, D) -> (B, D) -> (bs, C, D) -> (bs, D, C) -> (bs, 1, D, C)
    feats = cls_out.reshape(B, D)
    return feats.reshape(bs, C, D).transpose(0, 2, 1)[:, None, :, :]


# ----------------------------------------------------------------------------
# Deterministic parameter init (shapes follow the PyTorch module __init__)
# ----------------------------------------------------------------------------
def _xavier(key, out_dim, in_dim):
    a = math.sqrt(6.0 / (in_dim + out_dim))
    return jax.random.uniform(key, (out_dim, in_dim), jnp.float32, -a, a)


def init_params(key, n_timepoints, patch_size_t, nhead, num_layers):
    d = n_timepoints
    dff = 3 * d
    P = patch_size_t
    NP = n_timepoints // P
    S = NP + 1

    keys = jax.random.split(key, 3 + num_layers)

    # Conv2d(1, d, (P,1)) weight (d,1,P,1) -> stored as (P, d); bias (d,)
    bound = 1.0 / math.sqrt(P)
    w_pe = jax.random.uniform(keys[0], (P, d), jnp.float32, -bound, bound)
    b_pe = jax.random.uniform(keys[1], (1, d), jnp.float32, -bound, bound)

    cls = jnp.zeros((1, d), jnp.float32)                    # torch.zeros param
    pos = jax.random.normal(keys[2], (S, d), jnp.float32)   # torch.randn param

    layers = []
    for l in range(num_layers):
        lk = jax.random.split(keys[3 + l], 8)
        wqkv = _xavier(lk[0], 3 * d, d)                  # in_proj_weight (3d, d)
        wo = _xavier(lk[1], d, d)                        # out_proj.weight (d, d)
        w1 = _xavier(lk[2], dff, d)                      # linear1.weight (dff, d)
        w2 = _xavier(lk[3], d, dff)                      # linear2.weight (d, dff)
        b1 = jax.random.uniform(lk[4], (1, dff), jnp.float32,
                                -1.0 / math.sqrt(d), 1.0 / math.sqrt(d))
        b2 = jax.random.uniform(lk[5], (1, d), jnp.float32,
                                -1.0 / math.sqrt(dff), 1.0 / math.sqrt(dff))
        layers.append(dict(
            wqkv_t=wqkv.T, bqkv=jnp.zeros((1, 3 * d), jnp.float32),
            wo_t=wo.T, bo=jnp.zeros((1, d), jnp.float32),
            ln1w=jnp.ones((1, d), jnp.float32), ln1b=jnp.zeros((1, d), jnp.float32),
            w1_t=w1.T, b1=b1, w2_t=w2.T, b2=b2,
            ln2w=jnp.ones((1, d), jnp.float32), ln2b=jnp.zeros((1, d), jnp.float32),
        ))

    return dict(w_pe=w_pe, b_pe=b_pe, cls=cls, pos=pos, layers=layers,
                enc_norm_w=jnp.ones((1, d), jnp.float32),
                enc_norm_b=jnp.zeros((1, d), jnp.float32))


# ----------------------------------------------------------------------------
if __name__ == "__main__":
    bs, n_channels = 2, 4
    n_timepoints, patch_size_t = 64, 16      # d_model = 64, n_patches = 4
    nhead, num_layers = 4, 3

    key = jax.random.PRNGKey(0)
    kx, kp = jax.random.split(key)
    x = jax.random.normal(kx, (bs, 1, n_timepoints, n_channels), jnp.float32)
    params = init_params(kp, n_timepoints, patch_size_t, nhead, num_layers)

    fwd = jax.jit(functools.partial(temporal_transformer_forward,
                                    patch_size_t=patch_size_t, nhead=nhead))
    y = jax.block_until_ready(fwd(x, params))

    assert y.shape == (bs, 1, n_timepoints, n_channels), y.shape
    assert bool(jnp.all(jnp.isfinite(y)))
    # TODO(synk): pool='mean' branch and dropout (training mode) not
    # implemented; forward matches eval-mode pool='cls' semantics.
    print("KERNEL_OK")
</pallas_src>

<mosaic_0001>
module attributes {stable_mosaic.version = 11 : i64} {
  func.func @fused_transformer_kernel(%arg0: i32, %arg1: i32, %arg2: memref<1x20x16xbf16, #tpu.memory_space<vmem>>, %arg3: memref<16x64xbf16, #tpu.memory_space<vmem>>, %arg4: memref<1x20x64xf32, #tpu.memory_space<vmem>>, %arg5: memref<20x20xf32, #tpu.memory_space<vmem>>, %arg6: memref<1x64x192xbf16, #tpu.memory_space<vmem>>, %arg7: memref<1x1x192xf32, #tpu.memory_space<vmem>>, %arg8: memref<1x64x64xbf16, #tpu.memory_space<vmem>>, %arg9: memref<1x1x64xf32, #tpu.memory_space<vmem>>, %arg10: memref<1x1x64xf32, #tpu.memory_space<vmem>>, %arg11: memref<1x1x64xf32, #tpu.memory_space<vmem>>, %arg12: memref<1x64x192xbf16, #tpu.memory_space<vmem>>, %arg13: memref<1x1x192xf32, #tpu.memory_space<vmem>>, %arg14: memref<1x192x64xbf16, #tpu.memory_space<vmem>>, %arg15: memref<1x1x64xf32, #tpu.memory_space<vmem>>, %arg16: memref<1x1x64xf32, #tpu.memory_space<vmem>>, %arg17: memref<1x1x64xf32, #tpu.memory_space<vmem>>, %arg18: memref<1x64xf32, #tpu.memory_space<vmem>>, %arg19: memref<1x64xf32, #tpu.memory_space<vmem>>, %arg20: memref<1x4x64xf32, #tpu.memory_space<vmem>>, %arg21: memref<20x64xf32, #tpu.memory_space<vmem>>) attributes {dimension_semantics = [#tpu.dimension_semantics<parallel>, #tpu.dimension_semantics<arbitrary>], iteration_bounds = array<i64: 2, 3>, scalar_prefetch = 0 : i64, scratch_operands = 1 : i64, tpu.core_type = #tpu.core_type<tc>, window_params = [{transform_indices = @transform_0, window_bounds = array<i64: 1, 20, 16>}, {pipeline_mode = #tpu.pipeline_mode<synchronous>, transform_indices = @transform_1, window_bounds = array<i64: 16, 64>}, {transform_indices = @transform_2, window_bounds = array<i64: 1, 20, 64>}, {pipeline_mode = #tpu.pipeline_mode<synchronous>, transform_indices = @transform_3, window_bounds = array<i64: 20, 20>}, {transform_indices = @transform_4, window_bounds = array<i64: 1, 64, 192>}, {transform_indices = @transform_5, window_bounds = array<i64: 1, 1, 192>}, {transform_indices = @transform_6, window_bounds = array<i64: 1, 64, 64>}, {transform_indices = @transform_7, window_bounds = array<i64: 1, 1, 64>}, {transform_indices = @transform_8, window_bounds = array<i64: 1, 1, 64>}, {transform_indices = @transform_9, window_bounds = array<i64: 1, 1, 64>}, {transform_indices = @transform_10, window_bounds = array<i64: 1, 64, 192>}, {transform_indices = @transform_11, window_bounds = array<i64: 1, 1, 192>}, {transform_indices = @transform_12, window_bounds = array<i64: 1, 192, 64>}, {transform_indices = @transform_13, window_bounds = array<i64: 1, 1, 64>}, {transform_indices = @transform_14, window_bounds = array<i64: 1, 1, 64>}, {transform_indices = @transform_15, window_bounds = array<i64: 1, 1, 64>}, {pipeline_mode = #tpu.pipeline_mode<synchronous>, transform_indices = @transform_16, window_bounds = array<i64: 1, 64>}, {pipeline_mode = #tpu.pipeline_mode<synchronous>, transform_indices = @transform_17, window_bounds = array<i64: 1, 64>}, {transform_indices = @transform_18, window_bounds = array<i64: 1, 4, 64>}]} {
    %c0_i32 = arith.constant 0 : i32
    %0 = arith.cmpi eq, %arg1, %c0_i32 : i32
    %1 = arith.extui %0 : i1 to i32
    %c0_i32_0 = arith.constant 0 : i32
    %2 = arith.cmpi ne, %1, %c0_i32_0 : i32
    scf.if %2 {
      %c0_73 = arith.constant 0 : index
      %c0_74 = arith.constant 0 : index
      %c0_75 = arith.constant 0 : index
      %165 = vector.load %arg2[%c0_73, %c0_74, %c0_75] : memref<1x20x16xbf16, #tpu.memory_space<vmem>>, vector<1x20x16xbf16>
      %166 = vector.shape_cast %165 : vector<1x20x16xbf16> to vector<20x16xbf16>
      %c0_76 = arith.constant 0 : index
      %c0_77 = arith.constant 0 : index
      %167 = vector.load %arg3[%c0_76, %c0_77] : memref<16x64xbf16, #tpu.memory_space<vmem>>, vector<16x64xbf16>
      %cst_78 = arith.constant dense<0.000000e+00> : vector<20x64xf32>
      %168 = tpu.matmul %166, %167, %cst_78 {dimension_numbers = #tpu.dot_dimension_numbers<[1], [0], [0], [1], [0, 0, 1, 1], [], []>} : vector<20x16xbf16>, vector<16x64xbf16>, vector<20x64xf32> -> vector<20x64xf32>
      %c0_79 = arith.constant 0 : index
      %c0_80 = arith.constant 0 : index
      %c0_81 = arith.constant 0 : index
      %169 = vector.load %arg4[%c0_79, %c0_80, %c0_81] : memref<1x20x64xf32, #tpu.memory_space<vmem>>, vector<1x20x64xf32>
      %170 = vector.shape_cast %169 : vector<1x20x64xf32> to vector<20x64xf32>
      %171 = arith.addf %168, %170 : vector<20x64xf32>
      %c0_82 = arith.constant 0 : index
      %c0_83 = arith.constant 0 : index
      %172 = vector.load %arg21[%c0_82, %c0_83] : memref<20x64xf32, #tpu.memory_space<vmem>>, vector<20x64xf32>
      tpu.vector_store %arg21[%c0_82, %c0_83], %171 {strides = array<i32>} : memref<20x64xf32, #tpu.memory_space<vmem>>, vector<20x64xf32>,
    } else {
    }
    %c0 = arith.constant 0 : index
    %c0_1 = arith.constant 0 : index
    %3 = vector.load %arg21[%c0, %c0_1] : memref<20x64xf32, #tpu.memory_space<vmem>>, vector<20x64xf32>
    %4 = arith.truncf %3 : vector<20x64xf32> to vector<20x64xbf16>
    %c0_2 = arith.constant 0 : index
    %c0_3 = arith.constant 0 : index
    %c0_4 = arith.constant 0 : index
    %5 = vector.load %arg6[%c0_2, %c0_3, %c0_4] : memref<1x64x192xbf16, #tpu.memory_space<vmem>>, vector<1x64x192xbf16>
    %6 = vector.shape_cast %5 : vector<1x64x192xbf16> to vector<64x192xbf16>
    %cst = arith.constant dense<0.000000e+00> : vector<20x192xf32>
    %7 = tpu.matmul %4, %6, %cst {dimension_numbers = #tpu.dot_dimension_numbers<[1], [0], [0], [1], [0, 0, 1, 1], [], []>} : vector<20x64xbf16>, vector<64x192xbf16>, vector<20x192xf32> -> vector<20x192xf32>
    %c0_5 = arith.constant 0 : index
    %c0_6 = arith.constant 0 : index
    %c0_7 = arith.constant 0 : index
    %8 = vector.load %arg7[%c0_5, %c0_6, %c0_7] : memref<1x1x192xf32, #tpu.memory_space<vmem>>, vector<1x1x192xf32>
    %9 = vector.shape_cast %8 : vector<1x1x192xf32> to vector<1x192xf32>
    %10 = vector.broadcast %9 : vector<1x192xf32> to vector<20x192xf32>
    %11 = arith.addf %7, %10 : vector<20x192xf32>
    %12 = vector.extract_strided_slice %11 {offsets = [0, 0], sizes = [20, 64], strides = [1, 1]} : vector<20x192xf32> to vector<20x64xf32>
    %13 = vector.extract_strided_slice %11 {offsets = [0, 64], sizes = [20, 64], strides = [1, 1]} : vector<20x192xf32> to vector<20x64xf32>
    %14 = vector.extract_strided_slice %11 {offsets = [0, 128], sizes = [20, 64], strides = [1, 1]} : vector<20x192xf32> to vector<20x64xf32>
    %c0_8 = arith.constant 0 : index
    %c0_9 = arith.constant 0 : index
    %15 = vector.load %arg5[%c0_8, %c0_9] : memref<20x20xf32, #tpu.memory_space<vmem>>, vector<20x20xf32>
    %16 = vector.extract_strided_slice %12 {offsets = [0, 0], sizes = [20, 16], strides = [1, 1]} : vector<20x64xf32> to vector<20x16xf32>
    %17 = vector.extract_strided_slice %13 {offsets = [0, 0], sizes = [20, 16], strides = [1, 1]} : vector<20x64xf32> to vector<20x16xf32>
    %cst_10 = arith.constant dense<0.000000e+00> : vector<20x20xf32>
    %18 = tpu.matmul %16, %17, %cst_10 {dimension_numbers = #tpu.dot_dimension_numbers<[1], [1], [0], [0], [0, 0, 1, 0], [], []>} : vector<20x16xf32>, vector<20x16xf32>, vector<20x20xf32> -> vector<20x20xf32>
    %19 = arith.addf %18, %15 : vector<20x20xf32>
    %cst_11 = arith.constant dense<0xFF800000> : vector<20xf32>
    %20 = vector.multi_reduction <maximumf>, %19, %cst_11 [1] : vector<20x20xf32> to vector<20xf32>
    %21 = vector.shape_cast %20 : vector<20xf32> to vector<20x1xf32>
    %22 = vector.broadcast %21 : vector<20x1xf32> to vector<20x20xf32>
    %23 = arith.subf %19, %22 : vector<20x20xf32>
    %24 = math.exp %23 : vector<20x20xf32>
    %cst_12 = arith.constant dense<0.000000e+00> : vector<20xf32>
    %25 = vector.multi_reduction <add>, %24, %cst_12 [1] : vector<20x20xf32> to vector<20xf32>
    %26 = vector.shape_cast %25 : vector<20xf32> to vector<20x1xf32>
    %27 = tpu.reciprocal %26 {approx = true} : vector<20x1xf32> -> vector<20x1xf32>
    %28 = vector.broadcast %27 : vector<20x1xf32> to vector<20x20xf32>
    %29 = arith.mulf %24, %28 : vector<20x20xf32>
    %30 = vector.extract_strided_slice %14 {offsets = [0, 0], sizes = [20, 16], strides = [1, 1]} : vector<20x64xf32> to vector<20x16xf32>
    %cst_13 = arith.constant dense<0.000000e+00> : vector<20x16xf32>
    %31 = tpu.matmul %29, %30, %cst_13 {dimension_numbers = #tpu.dot_dimension_numbers<[1], [0], [0], [1], [0, 0, 1, 1], [], []>} : vector<20x20xf32>, vector<20x16xf32>, vector<20x16xf32> -> vector<20x16xf32>
    %32 = vector.extract_strided_slice %12 {offsets = [0, 16], sizes = [20, 16], strides = [1, 1]} : vector<20x64xf32> to vector<20x16xf32>
    %33 = vector.extract_strided_slice %13 {offsets = [0, 16], sizes = [20, 16], strides = [1, 1]} : vector<20x64xf32> to vector<20x16xf32>
    %cst_14 = arith.constant dense<0.000000e+00> : vector<20x20xf32>
    %34 = tpu.matmul %32, %33, %cst_14 {dimension_numbers = #tpu.dot_dimension_numbers<[1], [1], [0], [0], [0, 0, 1, 0], [], []>} : vector<20x16xf32>, vector<20x16xf32>, vector<20x20xf32> -> vector<20x20xf32>
    %35 = arith.addf %34, %15 : vector<20x20xf32>
    %cst_15 = arith.constant dense<0xFF800000> : vector<20xf32>
    %36 = vector.multi_reduction <maximumf>, %35, %cst_15 [1] : vector<20x20xf32> to vector<20xf32>
    %37 = vector.shape_cast %36 : vector<20xf32> to vector<20x1xf32>
    %38 = vector.broadcast %37 : vector<20x1xf32> to vector<20x20xf32>
    %39 = arith.subf %35, %38 : vector<20x20xf32>
    %40 = math.exp %39 : vector<20x20xf32>
    %cst_16 = arith.constant dense<0.000000e+00> : vector<20xf32>
    %41 = vector.multi_reduction <add>, %40, %cst_16 [1] : vector<20x20xf32> to vector<20xf32>
    %42 = vector.shape_cast %41 : vector<20xf32> to vector<20x1xf32>
    %43 = tpu.reciprocal %42 {approx = true} : vector<20x1xf32> -> vector<20x1xf32>
    %44 = vector.broadcast %43 : vector<20x1xf32> to vector<20x20xf32>
    %45 = arith.mulf %40, %44 : vector<20x20xf32>
    %46 = vector.extract_strided_slice %14 {offsets = [0, 16], sizes = [20, 16], strides = [1, 1]} : vector<20x64xf32> to vector<20x16xf32>
    %cst_17 = arith.constant dense<0.000000e+00> : vector<20x16xf32>
    %47 = tpu.matmul %45, %46, %cst_17 {dimension_numbers = #tpu.dot_dimension_numbers<[1], [0], [0], [1], [0, 0, 1, 1], [], []>} : vector<20x20xf32>, vector<20x16xf32>, vector<20x16xf32> -> vector<20x16xf32>
    %48 = vector.extract_strided_slice %12 {offsets = [0, 32], sizes = [20, 16], strides = [1, 1]} : vector<20x64xf32> to vector<20x16xf32>
    %49 = vector.extract_strided_slice %13 {offsets = [0, 32], sizes = [20, 16], strides = [1, 1]} : vector<20x64xf32> to vector<20x16xf32>
    %cst_18 = arith.constant dense<0.000000e+00> : vector<20x20xf32>
    %50 = tpu.matmul %48, %49, %cst_18 {dimension_numbers = #tpu.dot_dimension_numbers<[1], [1], [0], [0], [0, 0, 1, 0], [], []>} : vector<20x16xf32>, vector<20x16xf32>, vector<20x20xf32> -> vector<20x20xf32>
    %51 = arith.addf %50, %15 : vector<20x20xf32>
    %cst_19 = arith.constant dense<0xFF800000> : vector<20xf32>
    %52 = vector.multi_reduction <maximumf>, %51, %cst_19 [1] : vector<20x20xf32> to vector<20xf32>
    %53 = vector.shape_cast %52 : vector<20xf32> to vector<20x1xf32>
    %54 = vector.broadcast %53 : vector<20x1xf32> to vector<20x20xf32>
    %55 = arith.subf %51, %54 : vector<20x20xf32>
    %56 = math.exp %55 : vector<20x20xf32>
    %cst_20 = arith.constant dense<0.000000e+00> : vector<20xf32>
    %57 = vector.multi_reduction <add>, %56, %cst_20 [1] : vector<20x20xf32> to vector<20xf32>
    %58 = vector.shape_cast %57 : vector<20xf32> to vector<20x1xf32>
    %59 = tpu.reciprocal %58 {approx = true} : vector<20x1xf32> -> vector<20x1xf32>
    %60 = vector.broadcast %59 : vector<20x1xf32> to vector<20x20xf32>
    %61 = arith.mulf %56, %60 : vector<20x20xf32>
    %62 = vector.extract_strided_slice %14 {offsets = [0, 32], sizes = [20, 16], strides = [1, 1]} : vector<20x64xf32> to vector<20x16xf32>
    %cst_21 = arith.constant dense<0.000000e+00> : vector<20x16xf32>
    %63 = tpu.matmul %61, %62, %cst_21 {dimension_numbers = #tpu.dot_dimension_numbers<[1], [0], [0], [1], [0, 0, 1, 1], [], []>} : vector<20x20xf32>, vector<20x16xf32>, vector<20x16xf32> -> vector<20x16xf32>
    %64 = vector.extract_strided_slice %12 {offsets = [0, 48], sizes = [20, 16], strides = [1, 1]} : vector<20x64xf32> to vector<20x16xf32>
    %65 = vector.extract_strided_slice %13 {offsets = [0, 48], sizes = [20, 16], strides = [1, 1]} : vector<20x64xf32> to vector<20x16xf32>
    %cst_22 = arith.constant dense<0.000000e+00> : vector<20x20xf32>
    %66 = tpu.matmul %64, %65, %cst_22 {dimension_numbers = #tpu.dot_dimension_numbers<[1], [1], [0], [0], [0, 0, 1, 0], [], []>} : vector<20x16xf32>, vector<20x16xf32>, vector<20x20xf32> -> vector<20x20xf32>
    %67 = arith.addf %66, %15 : vector<20x20xf32>
    %cst_23 = arith.constant dense<0xFF800000> : vector<20xf32>
    %68 = vector.multi_reduction <maximumf>, %67, %cst_23 [1] : vector<20x20xf32> to vector<20xf32>
    %69 = vector.shape_cast %68 : vector<20xf32> to vector<20x1xf32>
    %70 = vector.broadcast %69 : vector<20x1xf32> to vector<20x20xf32>
    %71 = arith.subf %67, %70 : vector<20x20xf32>
    %72 = math.exp %71 : vector<20x20xf32>
    %cst_24 = arith.constant dense<0.000000e+00> : vector<20xf32>
    %73 = vector.multi_reduction <add>, %72, %cst_24 [1] : vector<20x20xf32> to vector<20xf32>
    %74 = vector.shape_cast %73 : vector<20xf32> to vector<20x1xf32>
    %75 = tpu.reciprocal %74 {approx = true} : vector<20x1xf32> -> vector<20x1xf32>
    %76 = vector.broadcast %75 : vector<20x1xf32> to vector<20x20xf32>
    %77 = arith.mulf %72, %76 : vector<20x20xf32>
    %78 = vector.extract_strided_slice %14 {offsets = [0, 48], sizes = [20, 16], strides = [1, 1]} : vector<20x64xf32> to vector<20x16xf32>
    %cst_25 = arith.constant dense<0.000000e+00> : vector<20x16xf32>
    %79 = tpu.matmul %77, %78, %cst_25 {dimension_numbers = #tpu.dot_dimension_numbers<[1], [0], [0], [1], [0, 0, 1, 1], [], []>} : vector<20x20xf32>, vector<20x16xf32>, vector<20x16xf32> -> vector<20x16xf32>
    %80 = tpu.concatenate %31, %47, %63, %79 in 1 : vector<20x16xf32>, vector<20x16xf32>, vector<20x16xf32>, vector<20x16xf32> -> vector<20x64xf32>
    %81 = arith.truncf %80 : vector<20x64xf32> to vector<20x64xbf16>
    %c0_26 = arith.constant 0 : index
    %c0_27 = arith.constant 0 : index
    %c0_28 = arith.constant 0 : index
    %82 = vector.load %arg8[%c0_26, %c0_27, %c0_28] : memref<1x64x64xbf16, #tpu.memory_space<vmem>>, vector<1x64x64xbf16>
    %83 = vector.shape_cast %82 : vector<1x64x64xbf16> to vector<64x64xbf16>
    %cst_29 = arith.constant dense<0.000000e+00> : vector<20x64xf32>
    %84 = tpu.matmul %81, %83, %cst_29 {dimension_numbers = #tpu.dot_dimension_numbers<[1], [0], [0], [1], [0, 0, 1, 1], [], []>} : vector<20x64xbf16>, vector<64x64xbf16>, vector<20x64xf32> -> vector<20x64xf32>
    %c0_30 = arith.constant 0 : index
    %c0_31 = arith.constant 0 : index
    %c0_32 = arith.constant 0 : index
    %85 = vector.load %arg9[%c0_30, %c0_31, %c0_32] : memref<1x1x64xf32, #tpu.memory_space<vmem>>, vector<1x1x64xf32>
    %86 = vector.shape_cast %85 : vector<1x1x64xf32> to vector<1x64xf32>
    %87 = vector.broadcast %86 : vector<1x64xf32> to vector<20x64xf32>
    %88 = arith.addf %84, %87 : vector<20x64xf32>
    %89 = arith.addf %3, %88 : vector<20x64xf32>
    %c0_33 = arith.constant 0 : index
    %c0_34 = arith.constant 0 : index
    %c0_35 = arith.constant 0 : index
    %90 = vector.load %arg10[%c0_33, %c0_34, %c0_35] : memref<1x1x64xf32, #tpu.memory_space<vmem>>, vector<1x1x64xf32>
    %91 = vector.shape_cast %90 : vector<1x1x64xf32> to vector<1x64xf32>
    %c0_36 = arith.constant 0 : index
    %c0_37 = arith.constant 0 : index
    %c0_38 = arith.constant 0 : index
    %92 = vector.load %arg11[%c0_36, %c0_37, %c0_38] : memref<1x1x64xf32, #tpu.memory_space<vmem>>, vector<1x1x64xf32>
    %93 = vector.shape_cast %92 : vector<1x1x64xf32> to vector<1x64xf32>
    %cst_39 = arith.constant dense<0.000000e+00> : vector<20xf32>
    %94 = vector.multi_reduction <add>, %89, %cst_39 [1] : vector<20x64xf32> to vector<20xf32>
    %95 = vector.shape_cast %94 : vector<20xf32> to vector<20x1xf32>
    %cst_40 = arith.constant 6.400000e+01 : f32
    %96 = vector.broadcast %cst_40 : f32 to vector<20x1xf32>
    %97 = arith.divf %95, %96 : vector<20x1xf32>
    %98 = vector.broadcast %97 : vector<20x1xf32> to vector<20x64xf32>
    %99 = arith.subf %89, %98 : vector<20x64xf32>
    %100 = arith.mulf %99, %99 : vector<20x64xf32>
    %cst_41 = arith.constant dense<0.000000e+00> : vector<20xf32>
    %101 = vector.multi_reduction <add>, %100, %cst_41 [1] : vector<20x64xf32> to vector<20xf32>
    %102 = vector.shape_cast %101 : vector<20xf32> to vector<20x1xf32>
    %cst_42 = arith.constant 6.400000e+01 : f32
    %103 = vector.broadcast %cst_42 : f32 to vector<20x1xf32>
    %104 = arith.divf %102, %103 : vector<20x1xf32>
    %105 = vector.broadcast %97 : vector<20x1xf32> to vector<20x64xf32>
    %106 = arith.subf %89, %105 : vector<20x64xf32>
    %cst_43 = arith.constant 9.99999974E-6 : f32
    %107 = vector.broadcast %cst_43 : f32 to vector<20x1xf32>
    %108 = arith.addf %104, %107 : vector<20x1xf32>
    %109 = math.rsqrt %108 : vector<20x1xf32>
    %110 = vector.broadcast %109 : vector<20x1xf32> to vector<20x64xf32>
    %111 = arith.mulf %106, %110 : vector<20x64xf32>
    %112 = vector.broadcast %91 : vector<1x64xf32> to vector<20x64xf32>
    %113 = arith.mulf %111, %112 : vector<20x64xf32>
    %114 = vector.broadcast %93 : vector<1x64xf32> to vector<20x64xf32>
    %115 = arith.addf %113, %114 : vector<20x64xf32>
    %116 = arith.truncf %115 : vector<20x64xf32> to vector<20x64xbf16>
    %c0_44 = arith.constant 0 : index
    %c0_45 = arith.constant 0 : index
    %c0_46 = arith.constant 0 : index
    %117 = vector.load %arg12[%c0_44, %c0_45, %c0_46] : memref<1x64x192xbf16, #tpu.memory_space<vmem>>, vector<1x64x192xbf16>
    %118 = vector.shape_cast %117 : vector<1x64x192xbf16> to vector<64x192xbf16>
    %cst_47 = arith.constant dense<0.000000e+00> : vector<20x192xf32>
    %119 = tpu.matmul %116, %118, %cst_47 {dimension_numbers = #tpu.dot_dimension_numbers<[1], [0], [0], [1], [0, 0, 1, 1], [], []>} : vector<20x64xbf16>, vector<64x192xbf16>, vector<20x192xf32> -> vector<20x192xf32>
    %c0_48 = arith.constant 0 : index
    %c0_49 = arith.constant 0 : index
    %c0_50 = arith.constant 0 : index
    %120 = vector.load %arg13[%c0_48, %c0_49, %c0_50] : memref<1x1x192xf32, #tpu.memory_space<vmem>>, vector<1x1x192xf32>
    %121 = vector.shape_cast %120 : vector<1x1x192xf32> to vector<1x192xf32>
    %122 = vector.broadcast %121 : vector<1x192xf32> to vector<20x192xf32>
    %123 = arith.addf %119, %122 : vector<20x192xf32>
    %cst_51 = arith.constant 0.000000e+00 : f32
    %124 = vector.broadcast %cst_51 : f32 to vector<20x192xf32>
    %125 = arith.maximumf %123, %124 : vector<20x192xf32>
    %126 = arith.truncf %125 : vector<20x192xf32> to vector<20x192xbf16>
    %c0_52 = arith.constant 0 : index
    %c0_53 = arith.constant 0 : index
    %c0_54 = arith.constant 0 : index
    %127 = vector.load %arg14[%c0_52, %c0_53, %c0_54] : memref<1x192x64xbf16, #tpu.memory_space<vmem>>, vector<1x192x64xbf16>
    %128 = vector.shape_cast %127 : vector<1x192x64xbf16> to vector<192x64xbf16>
    %cst_55 = arith.constant dense<0.000000e+00> : vector<20x64xf32>
    %129 = tpu.matmul %126, %128, %cst_55 {dimension_numbers = #tpu.dot_dimension_numbers<[1], [0], [0], [1], [0, 0, 1, 1], [], []>} : vector<20x192xbf16>, vector<192x64xbf16>, vector<20x64xf32> -> vector<20x64xf32>
    %c0_56 = arith.constant 0 : index
    %c0_57 = arith.constant 0 : index
    %c0_58 = arith.constant 0 : index
    %130 = vector.load %arg15[%c0_56, %c0_57, %c0_58] : memref<1x1x64xf32, #tpu.memory_space<vmem>>, vector<1x1x64xf32>
    %131 = vector.shape_cast %130 : vector<1x1x64xf32> to vector<1x64xf32>
    %132 = vector.broadcast %131 : vector<1x64xf32> to vector<20x64xf32>
    %133 = arith.addf %129, %132 : vector<20x64xf32>
    %134 = arith.addf %115, %133 : vector<20x64xf32>
    %c0_59 = arith.constant 0 : index
    %c0_60 = arith.constant 0 : index
    %c0_61 = arith.constant 0 : index
    %135 = vector.load %arg16[%c0_59, %c0_60, %c0_61] : memref<1x1x64xf32, #tpu.memory_space<vmem>>, vector<1x1x64xf32>
    %136 = vector.shape_cast %135 : vector<1x1x64xf32> to vector<1x64xf32>
    %c0_62 = arith.constant 0 : index
    %c0_63 = arith.constant 0 : index
    %c0_64 = arith.constant 0 : index
    %137 = vector.load %arg17[%c0_62, %c0_63, %c0_64] : memref<1x1x64xf32, #tpu.memory_space<vmem>>, vector<1x1x64xf32>
    %138 = vector.shape_cast %137 : vector<1x1x64xf32> to vector<1x64xf32>
    %cst_65 = arith.constant dense<0.000000e+00> : vector<20xf32>
    %139 = vector.multi_reduction <add>, %134, %cst_65 [1] : vector<20x64xf32> to vector<20xf32>
    %140 = vector.shape_cast %139 : vector<20xf32> to vector<20x1xf32>
    %cst_66 = arith.constant 6.400000e+01 : f32
    %141 = vector.broadcast %cst_66 : f32 to vector<20x1xf32>
    %142 = arith.divf %140, %141 : vector<20x1xf32>
    %143 = vector.broadcast %142 : vector<20x1xf32> to vector<20x64xf32>
    %144 = arith.subf %134, %143 : vector<20x64xf32>
    %145 = arith.mulf %144, %144 : vector<20x64xf32>
    %cst_67 = arith.constant dense<0.000000e+00> : vector<20xf32>
    %146 = vector.multi_reduction <add>, %145, %cst_67 [1] : vector<20x64xf32> to vector<20xf32>
    %147 = vector.shape_cast %146 : vector<20xf32> to vector<20x1xf32>
    %cst_68 = arith.constant 6.400000e+01 : f32
    %148 = vector.broadcast %cst_68 : f32 to vector<20x1xf32>
    %149 = arith.divf %147, %148 : vector<20x1xf32>
    %150 = vector.broadcast %142 : vector<20x1xf32> to vector<20x64xf32>
    %151 = arith.subf %134, %150 : vector<20x64xf32>
    %cst_69 = arith.constant 9.99999974E-6 : f32
    %152 = vector.broadcast %cst_69 : f32 to vector<20x1xf32>
    %153 = arith.addf %149, %152 : vector<20x1xf32>
    %154 = math.rsqrt %153 : vector<20x1xf32>
    %155 = vector.broadcast %154 : vector<20x1xf32> to vector<20x64xf32>
    %156 = arith.mulf %151, %155 : vector<20x64xf32>
    %157 = vector.broadcast %136 : vector<1x64xf32> to vector<20x64xf32>
    %158 = arith.mulf %156, %157 : vector<20x64xf32>
    %159 = vector.broadcast %138 : vector<1x64xf32> to vector<20x64xf32>
    %160 = arith.addf %158, %159 : vector<20x64xf32>
    %c0_70 = arith.constant 0 : index
    %c0_71 = arith.constant 0 : index
    %161 = vector.load %arg21[%c0_70, %c0_71] : memref<20x64xf32, #tpu.memory_space<vmem>>, vector<20x64xf32>
    tpu.vector_store %arg21[%c0_70, %c0_71], %160 {strides = array<i32>} : memref<20x64xf32, #tpu.memory_space<vmem>>, vector<20x64xf32>,
    %c2_i32 = arith.constant 2 : i32
    %162 = arith.cmpi eq, %arg1, %c2_i32 : i32
    %163 = arith.extui %162 : i1 to i32
    %c0_i32_72 = arith.constant 0 : i32
    %164 = arith.cmpi ne, %163, %c0_i32_72 : i32
    scf.if %164 {
      %165 = vector.extract_strided_slice %160 {offsets = [0, 0], sizes = [4, 64], strides = [1, 1]} : vector<20x64xf32> to vector<4x64xf32>
      %c0_73 = arith.constant 0 : index
      %c0_74 = arith.constant 0 : index
      %166 = vector.load %arg18[%c0_73, %c0_74] : memref<1x64xf32, #tpu.memory_space<vmem>>, vector<1x64xf32>
      %c0_75 = arith.constant 0 : index
      %c0_76 = arith.constant 0 : index
      %167 = vector.load %arg19[%c0_75, %c0_76] : memref<1x64xf32, #tpu.memory_space<vmem>>, vector<1x64xf32>
      %cst_77 = arith.constant dense<0.000000e+00> : vector<4xf32>
      %168 = vector.multi_reduction <add>, %165, %cst_77 [1] : vector<4x64xf32> to vector<4xf32>
      %169 = vector.shape_cast %168 : vector<4xf32> to vector<4x1xf32>
      %cst_78 = arith.constant 6.400000e+01 : f32
      %170 = vector.broadcast %cst_78 : f32 to vector<4x1xf32>
      %171 = arith.divf %169, %170 : vector<4x1xf32>
      %172 = vector.broadcast %171 : vector<4x1xf32> to vector<4x64xf32>
      %173 = arith.subf %165, %172 : vector<4x64xf32>
      %174 = arith.mulf %173, %173 : vector<4x64xf32>
      %cst_79 = arith.constant dense<0.000000e+00> : vector<4xf32>
      %175 = vector.multi_reduction <add>, %174, %cst_79 [1] : vector<4x64xf32> to vector<4xf32>
      %176 = vector.shape_cast %175 : vector<4xf32> to vector<4x1xf32>
      %cst_80 = arith.constant 6.400000e+01 : f32
      %177 = vector.broadcast %cst_80 : f32 to vector<4x1xf32>
      %178 = arith.divf %176, %177 : vector<4x1xf32>
      %179 = vector.broadcast %171 : vector<4x1xf32> to vector<4x64xf32>
      %180 = arith.subf %165, %179 : vector<4x64xf32>
      %cst_81 = arith.constant 9.99999974E-6 : f32
      %181 = vector.broadcast %cst_81 : f32 to vector<4x1xf32>
      %182 = arith.addf %178, %181 : vector<4x1xf32>
      %183 = math.rsqrt %182 : vector<4x1xf32>
      %184 = vector.broadcast %183 : vector<4x1xf32> to vector<4x64xf32>
      %185 = arith.mulf %180, %184 : vector<4x64xf32>
      %186 = vector.broadcast %166 : vector<1x64xf32> to vector<4x64xf32>
      %187 = arith.mulf %185, %186 : vector<4x64xf32>
      %188 = vector.broadcast %167 : vector<1x64xf32> to vector<4x64xf32>
      %189 = arith.addf %187, %188 : vector<4x64xf32>
      %c0_82 = arith.constant 0 : index
      %c0_83 = arith.constant 0 : index
      %c0_84 = arith.constant 0 : index
      %190 = vector.load %arg20[%c0_82, %c0_83, %c0_84] : memref<1x4x64xf32, #tpu.memory_space<vmem>>, vector<1x4x64xf32>
      %191 = vector.shape_cast %190 : vector<1x4x64xf32> to vector<4x64xf32>
      %192 = vector.shape_cast %189 : vector<4x64xf32> to vector<1x4x64xf32>
      tpu.vector_store %arg20[%c0_82, %c0_83, %c0_84], %192 {strides = array<i32>} : memref<1x4x64xf32, #tpu.memory_space<vmem>>, vector<1x4x64xf32>,
    } else {
    }
    return
  }
  func.func @transform_0(%arg0: i32, %arg1: i32) -> (i32, i32, i32) {
    %c0_i32 = arith.constant 0 : i32
    %c0_i32_0 = arith.constant 0 : i32
    %c0_i32_1 = arith.constant 0 : i32
    return %arg0, %c0_i32, %c0_i32_0 : i32, i32, i32
  }
  func.func @transform_1(%arg0: i32, %arg1: i32) -> (i32, i32) {
    %c0_i32 = arith.constant 0 : i32
    %c0_i32_0 = arith.constant 0 : i32
    %c0_i32_1 = arith.constant 0 : i32
    return %c0_i32, %c0_i32_0 : i32, i32
  }
  func.func @transform_2(%arg0: i32, %arg1: i32) -> (i32, i32, i32) {
    %c0_i32 = arith.constant 0 : i32
    %c0_i32_0 = arith.constant 0 : i32
    %c0_i32_1 = arith.constant 0 : i32
    return %arg0, %c0_i32, %c0_i32_0 : i32, i32, i32
  }
  func.func @transform_3(%arg0: i32, %arg1: i32) -> (i32, i32) {
    %c0_i32 = arith.constant 0 : i32
    %c0_i32_0 = arith.constant 0 : i32
    %c0_i32_1 = arith.constant 0 : i32
    return %c0_i32, %c0_i32_0 : i32, i32
  }
  func.func @transform_4(%arg0: i32, %arg1: i32) -> (i32, i32, i32) {
    %c0_i32 = arith.constant 0 : i32
    %c0_i32_0 = arith.constant 0 : i32
    %c0_i32_1 = arith.constant 0 : i32
    return %arg1, %c0_i32, %c0_i32_0 : i32, i32, i32
  }
  func.func @transform_5(%arg0: i32, %arg1: i32) -> (i32, i32, i32) {
    %c0_i32 = arith.constant 0 : i32
    %c0_i32_0 = arith.constant 0 : i32
    %c0_i32_1 = arith.constant 0 : i32
    return %arg1, %c0_i32, %c0_i32_0 : i32, i32, i32
  }
  func.func @transform_6(%arg0: i32, %arg1: i32) -> (i32, i32, i32) {
    %c0_i32 = arith.constant 0 : i32
    %c0_i32_0 = arith.constant 0 : i32
    %c0_i32_1 = arith.constant 0 : i32
    return %arg1, %c0_i32, %c0_i32_0 : i32, i32, i32
  }
  func.func @transform_7(%arg0: i32, %arg1: i32) -> (i32, i32, i32) {
    %c0_i32 = arith.constant 0 : i32
    %c0_i32_0 = arith.constant 0 : i32
    %c0_i32_1 = arith.constant 0 : i32
    return %arg1, %c0_i32, %c0_i32_0 : i32, i32, i32
  }
  func.func @transform_8(%arg0: i32, %arg1: i32) -> (i32, i32, i32) {
    %c0_i32 = arith.constant 0 : i32
    %c0_i32_0 = arith.constant 0 : i32
    %c0_i32_1 = arith.constant 0 : i32
    return %arg1, %c0_i32, %c0_i32_0 : i32, i32, i32
  }
  func.func @transform_9(%arg0: i32, %arg1: i32) -> (i32, i32, i32) {
    %c0_i32 = arith.constant 0 : i32
    %c0_i32_0 = arith.constant 0 : i32
    %c0_i32_1 = arith.constant 0 : i32
    return %arg1, %c0_i32, %c0_i32_0 : i32, i32, i32
  }
  func.func @transform_10(%arg0: i32, %arg1: i32) -> (i32, i32, i32) {
    %c0_i32 = arith.constant 0 : i32
    %c0_i32_0 = arith.constant 0 : i32
    %c0_i32_1 = arith.constant 0 : i32
    return %arg1, %c0_i32, %c0_i32_0 : i32, i32, i32
  }
  func.func @transform_11(%arg0: i32, %arg1: i32) -> (i32, i32, i32) {
    %c0_i32 = arith.constant 0 : i32
    %c0_i32_0 = arith.constant 0 : i32
    %c0_i32_1 = arith.constant 0 : i32
    return %arg1, %c0_i32, %c0_i32_0 : i32, i32, i32
  }
  func.func @transform_12(%arg0: i32, %arg1: i32) -> (i32, i32, i32) {
    %c0_i32 = arith.constant 0 : i32
    %c0_i32_0 = arith.constant 0 : i32
    %c0_i32_1 = arith.constant 0 : i32
    return %arg1, %c0_i32, %c0_i32_0 : i32, i32, i32
  }
  func.func @transform_13(%arg0: i32, %arg1: i32) -> (i32, i32, i32) {
    %c0_i32 = arith.constant 0 : i32
    %c0_i32_0 = arith.constant 0 : i32
    %c0_i32_1 = arith.constant 0 : i32
    return %arg1, %c0_i32, %c0_i32_0 : i32, i32, i32
  }
  func.func @transform_14(%arg0: i32, %arg1: i32) -> (i32, i32, i32) {
    %c0_i32 = arith.constant 0 : i32
    %c0_i32_0 = arith.constant 0 : i32
    %c0_i32_1 = arith.constant 0 : i32
    return %arg1, %c0_i32, %c0_i32_0 : i32, i32, i32
  }
  func.func @transform_15(%arg0: i32, %arg1: i32) -> (i32, i32, i32) {
    %c0_i32 = arith.constant 0 : i32
    %c0_i32_0 = arith.constant 0 : i32
    %c0_i32_1 = arith.constant 0 : i32
    return %arg1, %c0_i32, %c0_i32_0 : i32, i32, i32
  }
  func.func @transform_16(%arg0: i32, %arg1: i32) -> (i32, i32) {
    %c0_i32 = arith.constant 0 : i32
    %c0_i32_0 = arith.constant 0 : i32
    %c0_i32_1 = arith.constant 0 : i32
    return %c0_i32, %c0_i32_0 : i32, i32
  }
  func.func @transform_17(%arg0: i32, %arg1: i32) -> (i32, i32) {
    %c0_i32 = arith.constant 0 : i32
    %c0_i32_0 = arith.constant 0 : i32
    %c0_i32_1 = arith.constant 0 : i32
    return %c0_i32, %c0_i32_0 : i32, i32
  }
  func.func @transform_18(%arg0: i32, %arg1: i32) -> (i32, i32, i32) {
    %c0_i32 = arith.constant 0 : i32
    %c0_i32_0 = arith.constant 0 : i32
    %c0_i32_1 = arith.constant 0 : i32
    return %arg0, %c0_i32, %c0_i32_0 : i32, i32, i32
  }
}

</mosaic_0001>

<bundles_post_ra>
// kernel: squeeze.0
= control target key start
LH: loop header
LB: loop body
LE: loop exit
PB: predicated region body
PF: predicated region fallthrough
CT: control target
= control target key end

     0   :  { %vm34_vm0 = vcmask 130048   ;;  %s140_s8 = smov 80   ;;  %s141_s9 = smov 96   ;;  %v142_v11 = vmov 0.0   ;;  %s188_s0 = inlined_call_operand.vmem [shape: bf16[2,1,64,4], index: 0, kind: input, shape index: {}]   ;;  %s189_s1 = inlined_call_operand.vmem [shape: bf16[2,4,16,4], index: 1, kind: output, shape index: {}]  }
   0x1   :  { %v127_v0 = vld [vmem:[%s188_s0] sm:$0xf]   ;;  %s139_s0 = smov 112  }
   0x2   :  { %v16_v1 = vunpack.c.l.bf16 %v127_v0 }
   0x4   :  { %19 = vst [vmem:[#allocation1] ss:$8 sps:$4 sm:$0xff] %v16_v1  }
   0xb   :  { %v33_v2 = vld [vmem:[#allocation1] sm:$0xf]   ;;  %v37_v4 = vld [vmem:[#allocation1 + $0x8] sm:$0xf]  }
   0xc   :  { %v41_v3 = vld.sshfl [vmem:[#allocation1] sm:$0xff pattern:$0xba983210]   ;;  %35 = vst.msk [vmem:[#allocation0] ss:$8 sm:$0xf] %vm34_vm0, %v33_v2  }
   0xd   :  { %42 = vrot.lane.b32.xlu0 %v41_v3, %s139_s0  ;;  %58 = vrot.lane.b32.xlu1 %v41_v3, %s140_s8  ;;  %40 = vst.msk [vmem:[#allocation0 + $0x20] ss:$8 sm:$0xf] %vm34_vm0, %v37_v4  }
  0x11   :  { %50 = vrot.lane.b32.xlu0 %v41_v3, %s141_s9 }
  0x7f   :  { %v43_v5 = vpop.permute.xlu0 %42   ;;  %v59_v6 = vpop.permute.xlu1 %58  }
  0x80   :  { %46 = vst.msk [vmem:[#allocation0 + $0x1] ss:$8 sm:$0xf] %vm34_vm0, %v43_v5   ;;  %48 = vst.msk [vmem:[#allocation0 + $0x1] ss:$8 sm:$0xf0] %vm34_vm0, %v43_v5  }
  0x81   :  { %62 = vst.msk [vmem:[#allocation0 + $0x3] ss:$8 sm:$0xf] %vm34_vm0, %v59_v6   ;;  %64 = vst.msk [vmem:[#allocation0 + $0x3] ss:$8 sm:$0xf0] %vm34_vm0, %v59_v6  }
  0x83   :  { %v51_v7 = vpop.permute.xlu0 %50  }
  0x84   :  { %54 = vst.msk [vmem:[#allocation0 + $0x2] ss:$8 sm:$0xf] %vm34_vm0, %v51_v7   ;;  %56 = vst.msk [vmem:[#allocation0 + $0x2] ss:$8 sm:$0xf0] %vm34_vm0, %v51_v7  }
  0x8b   :  { %v69_v8 = vld [vmem:[#allocation0] sm:$0xf]  ;;  %v74_v9 = vld [vmem:[#allocation0 + $0x8] sm:$0xf]  ;;  %v80_v10 = vld [vmem:[#allocation0 + $0x10] sm:$0xf] }
  0x8c   :  { %v70_v12 = vpack.c.bf16 %v142_v11, %v69_v8  ;;  %v75_v13 = vpack.c.bf16 %v142_v11, %v74_v9  ;;  %v81_v14 = vpack.c.bf16 %v142_v11, %v80_v10  ;;  %v87_v15 = vld [vmem:[#allocation0 + $0x18] sm:$0xf]  ;;  %v94_v16 = vld [vmem:[#allocation0 + $0x20] sm:$0xf]  ;;  %v101_v17 = vld [vmem:[#allocation0 + $0x28] sm:$0xf] }
  0x8d   :  { %v88_v18 = vpack.c.bf16 %v142_v11, %v87_v15  ;;  %v95_v19 = vpack.c.bf16 %v142_v11, %v94_v16  ;;  %v102_v20 = vpack.c.bf16 %v142_v11, %v101_v17  ;;  %v108_v21 = vld [vmem:[#allocation0 + $0x30] sm:$0xf]  ;;  %v115_v22 = vld [vmem:[#allocation0 + $0x38] sm:$0xf] }
  0x8e   :  { %72 = vst [vmem:[%s189_s1] sm:$0x3] %v70_v12  ;;  %128 = vst [vmem:[%s189_s1 + $0x2] sm:$0x3] %v75_v13  ;;  %v109_v23 = vpack.c.bf16 %v142_v11, %v108_v21  ;;  %v116_v24 = vpack.c.bf16 %v142_v11, %v115_v22 }
  0x8f   :  { %129 = vst [vmem:[%s189_s1 + $0x4] sm:$0x3] %v81_v14  ;;  %130 = vst [vmem:[%s189_s1 + $0x6] sm:$0x3] %v88_v18 }
  0x90   :  { %131 = vst [vmem:[%s189_s1 + $0x8] sm:$0x3] %v95_v19  ;;  %132 = vst [vmem:[%s189_s1 + $0xa] sm:$0x3] %v102_v20 }
  0x91   :  { %133 = vst [vmem:[%s189_s1 + $0xc] sm:$0x3] %v109_v23  ;;  %134 = vst [vmem:[%s189_s1 + $0xe] sm:$0x3] %v116_v24 }

// kernel: temporal_transformer_forward.1
= control target key start
LH: loop header
LB: loop body
LE: loop exit
PB: predicated region body
PF: predicated region fallthrough
CT: control target
= control target key end

     0   :  { %s4225_s0 = inlined_call_operand.vmem [shape: bf16[2,20,16], index: 0, kind: input, shape index: {}]   ;;  %s4226_s1 = inlined_call_operand.vmem [shape: bf16[16,64], index: 1, kind: input, shape index: {}]   ;;  %s4227_s2 = inlined_call_operand.vmem [shape: f32[2,20,64], index: 2, kind: input, shape index: {}]   ;;  %s4228_s3 = inlined_call_operand.vmem [shape: f32[20,20], index: 3, kind: input, shape index: {}]   ;;  %s4229_s4 = inlined_call_operand.vmem [shape: bf16[3,64,192], index: 4, kind: input, shape index: {}]   ;;  %s4230_s5 = inlined_call_operand.vmem [shape: f32[3,1,192], index: 5, kind: input, shape index: {}]   ;;  %s4231_s6 = inlined_call_operand.vmem [shape: bf16[3,64,64], index: 6, kind: input, shape index: {}]   ;;  %s4232_s7 = inlined_call_operand.vmem [shape: f32[3,1,64], index: 7, kind: input, shape index: {}]   ;;  %s4233_s8 = inlined_call_operand.vmem [shape: f32[3,1,64], index: 8, kind: input, shape index: {}]   ;;  %s4234_s9 = inlined_call_operand.vmem [shape: f32[3,1,64], index: 9, kind: input, shape index: {}]   ;;  %s4235_s10 = inlined_call_operand.vmem [shape: bf16[3,64,192], index: 10, kind: input, shape index: {}]   ;;  %s4236_s11 = inlined_call_operand.vmem [shape: f32[3,1,192], index: 11, kind: input, shape index: {}]   ;;  %s4237_s12 = inlined_call_operand.vmem [shape: bf16[3,192,64], index: 12, kind: input, shape index: {}]   ;;  %s4238_s13 = inlined_call_operand.vmem [shape: f32[3,1,64], index: 13, kind: input, shape index: {}]   ;;  %s4239_s14 = inlined_call_operand.vmem [shape: f32[3,1,64], index: 14, kind: input, shape index: {}]   ;;  %s4240_s15 = inlined_call_operand.vmem [shape: f32[3,1,64], index: 15, kind: input, shape index: {}]   ;;  %s4241_s16 = inlined_call_operand.vmem [shape: f32[1,64], index: 16, kind: input, shape index: {}]   ;;  %s4242_s17 = inlined_call_operand.vmem [shape: f32[1,64], index: 17, kind: input, shape index: {}]   ;;  %s4243_s18 = inlined_call_operand.hbm [shape: f32[2,4,64], index: 18, kind: output, shape index: {}]  }
   0x1   :  { %4261 = sst [smem:[#allocation21_spill]] %s4225_s0 }
   0x2   :  { %4262 = sst [smem:[#allocation22_spill]] %s4226_s1 }
   0x3   :  { %4263 = sst [smem:[#allocation23_spill]] %s4227_s2 }
   0x4   :  { %4264 = sst [smem:[#allocation24_spill]] %s4228_s3 }
   0x5   :  { %4265 = sst [smem:[#allocation25_spill]] %s4229_s4 }
   0x6   :  { %4266 = sst [smem:[#allocation26_spill]] %s4230_s5 }
   0x7   :  { %4267 = sst [smem:[#allocation27_spill]] %s4231_s6 }
   0x8   :  { %4268 = sst [smem:[#allocation28_spill]] %s4235_s10 }
   0x9   :  { %4269 = sst [smem:[#allocation29_spill]] %s4237_s12 }
   0xa   :  { %4270 = sst [smem:[#allocation30_spill]] %s4241_s16 }
   0xb   :  { %4271 = sst [smem:[#allocation31_spill]] %s4242_s17 }
   0xc   :  { %4272 = sst [smem:[#allocation32_spill]] %s4243_s18 }
   0xd   :  { %23 = vsyncpa [#allocation4], 0 }
   0xe   :  { %25 = vsyncpa [#allocation4 + $0x1], 0  ;;  %s3557_s27 = smov 0   ;;  %s3559_s28 = smov 0  }
   0xf   :  { %s3561_s29 = smov 0   ;;  %s3563_s30 = smov 0  }
  0x10   :  { %s3565_s0 = smov 0   ;;  %s3567_s19 = smov 0  }
  0x11   :  { %s3569_s1 = smov 0   ;;  %s3571_s20 = smov 0  }
  0x12 LB: > { %4273 = sst [smem:[#allocation6_spill]] %s3420_s27  ;;  %s2770_s21 = sadd.s32 4294967295, %s3448_s20   ;;  %s3448_s20 = sphi %s3571_s20, %s31_s20   ;;  %s3444_s1 = sphi %s3569_s1, %s4325_s1   ;;  %s3440_s19 = sphi %s3567_s19, %s4324_s19   ;;  %s3436_s0 = sphi %s3565_s0, %s4323_s0   ;;  %s3432_s30 = sphi %s3563_s30, %s4322_s30   ;;  %s3428_s29 = sphi %s3561_s29, %s4321_s29   ;;  %s3424_s28 = sphi %s3559_s28, %s4320_s28   ;;  %s3420_s27 = sphi %s3557_s27, %s4319_s27  }
  0x13   : > { %4274 = sst [smem:[#allocation7_spill]] %s3424_s28  ;;  %s2771_s22 = sadd.s32 4294967294, %s3448_s20  }
  0x14   : > { %4275 = sst [smem:[#allocation8_spill]] %s3428_s29  ;;  %s40_s2 = sadd.s32 1, %s3440_s19 }
  0x15   : > { %4276 = sst [smem:[#allocation9_spill]] %s3432_s30  ;;  %p41_p0 = scmp.ge.s32.totalorder %s40_s2, 3 }
  0x16   : > { %4277 = sst [smem:[#allocation10_spill]] %s3436_s0  ;;  %s43_s23 = sadd.s32 1, %s3444_s1 }
  0x17   : > { %4278 = sst [smem:[#allocation11_spill]] %s3440_s19  ;;  %p508_p1 = scmp.ne.s32.totalorder %s3428_s29, %s3424_s28 }
  0x18   : > { %4279 = sst [smem:[#allocation12_spill]] %s3444_s1  ;;  %p509_p2 = scmp.eq.s32.totalorder %s2770_s21, 5 }
  0x19   : > { %4280 = sst [smem:[#allocation13_spill]] %s3448_s20  ;;  %s4327_s2 = smov (%p41_p0, %s40_s2), 0 }
  0x1a   : > { %4281 = sst [smem:[#allocation14_spill]] %s4327_s2  ;;  %s4329_s23 = smov (!%p41_p0, %s43_s23), %s3444_s1 }
  0x1b   : > { %p3606_p3 = por %p509_p2, %p508_p1  ;;  %p514_p4 = scmp.ne.s32.totalorder %s3424_s28, %s3420_s27 }
  0x1c   : > { %p45_p5 = scmp.ge.s32.totalorder %s4329_s23, 2  ;;  %p515_p6 = scmp.eq.s32.totalorder %s2771_s22, 5 }
  0x1d   : > { %s4282_s24 = scalar_select %p3606_p3, 1, 0 }
  0x1e   : > { %p2774_p7 = scmp.ge.s32.totalorder %s3448_s20, 1  ;;  %p643_p8 = scmp.lt.s32.totalorder %s3448_s20, 7 }
  0x1f   : > { %4283 = sst [smem:[#allocation15_spill]] %s4282_s24  ;;  %s4331_s23 = smov (%p45_p5, %s4329_s23), 0 }
  0x20   : > { %4284 = sst [smem:[#allocation16_spill]] %s4331_s23  ;;  %p3616_p9 = por %p515_p6, %p514_p4 }
  0x21   : > { %p644_p10 = pnand %p2774_p7, %p643_p8  ;;  %s495_s26 = ssub.s32 %s3444_s1, %s4331_s23 }
  0x22   : > { %s4285_s25 = scalar_select %p3616_p9, 1, 0 }
  0x23   : > { %s498_s21 = sadd.s32 1, %s3428_s29  ;;  %p496_p11 = scmp.eq.s32.totalorder %s495_s26, 0 }
  0x24   : > { %4286 = sst [smem:[#allocation17_spill]] %s4285_s25  ;;  %647 = sbr.rel (%p644_p10) target bundleno = 3229 (0xc9d), region = 92 }
  0x25   : > { %s3624_s2 = scalar_select %p496_p11, %s3428_s29, %s498_s21  }
  0x27   : > { %4287 = sst [smem:[#allocation18_spill]] %s3624_s2 }
  0x2b   : > { %s4249_s22 = sand.u32 1, %s3424_s28   ;;  %p748_p12 = scmp.lt.s32.totalorder %s3436_s0, 1 }
  0x2c   : > { %s3630_s19 = sshll.u32 %s4249_s22, 2  ;;  %p758_p13 = scmp.lt.s32.totalorder %s3432_s30, 2 }
  0x2d   : > { %s749_s25 = scalar_select %p748_p12, %s3436_s0, 1 }
  0x2e   : > { %s3635_s27 = scalar_select %p758_p13, %s3432_s30, 2 }
  0x2f   : > { %s3112_s26 = smul.u32 12, %s749_s25  ;;  %s4288_s22 = sld [smem:[#allocation21_spill]] }
  0x30   : > { %s3113_s21 = smul.u32 24, %s749_s25  ;;  %s2886_s23 = sshll.u32 %s3635_s27, 6 }
  0x31   : > { %s4289_s4 = sld [smem:[#allocation25_spill]]  ;;  %s4291_s17 = sld [smem:[#allocation23_spill]] }
  0x32   : > { %s2780_s3 = sshll.u32 %s3635_s27, 1  ;;  %s4292_s5 = sld [smem:[#allocation26_spill]] }
  0x33   : > { %s2887_s1 = sshll.u32 %s3635_s27, 5  ;;  %s4294_s6 = sld [smem:[#allocation27_spill]] }
  0x34   : > { %s4295_s10 = sld [smem:[#allocation28_spill]]  ;;  %s3114_s18 = smul.u32 96, %s3635_s27 }
  0x35   : > { %s752_s29 = scalar_lea.vmem %s4288_s22, %s3112_s26  ;;  %s3683_s22 = scalar_lea.vmem %s4236_s11, %s2780_s3 }
  0x36   : > { %s797_s28 = scalar_lea.vmem %s4238_s13, %s3635_s27  ;;  %s4297_s2 = sld [smem:[#allocation9_spill]] }
  0x37   : > { %s3644_s24 = scalar_lea.vmem %s4289_s4, %s2886_s23  ;;  %s3649_s16 = scalar_lea.vmem %s4291_s17, %s3113_s21 }
  0x38   : > { %4290 = sst [smem:[#allocation19_spill]] %s3644_s24  ;;  %s3655_s12 = scalar_lea.vmem %s4292_s5, %s2780_s3 }
  0x39   : > { %4293 = sst [smem:[#allocation20_spill]] %s3655_s12  ;;  %s3661_s26 = scalar_lea.vmem %s4294_s6, %s2887_s1 }
  0x3a   : > { %s3678_s12 = scalar_lea.vmem %s4295_s10, %s2886_s23  ;;  %s800_s24 = scalar_lea.vmem %s4239_s14, %s3635_s27 }
  0x3b   : > { %s803_s5 = scalar_lea.vmem %s4240_s15, %s3635_s27  ;;  %s4296_s6 = sld [smem:[#allocation29_spill]] }
  0x3c   : > { %s747_s3 = scalar_lea.vmem [#allocation3], %s3630_s19  ;;  %p2787_p0 = scmp.ne.s32.totalorder %s4297_s2, 0 }
  0x3d   : > { %s4298_s20 = sld [smem:[#allocation22_spill]] (!%p2787_p0)  ;;  %vm831_vm0 = vcmask (!%p2787_p0), 130048   ;;  %v3198_v1 = vld [vmem:[%s752_s29] sm:$0xff] (!%p2787_p0)   ;;  %v3199_v2 = vld [vmem:[%s752_s29 + $0x8] ss:$0 sps:$4 sm:$0x33] (!%p2787_p0)  }
  0x3e   : > { %808 = sbr.rel (%p2787_p0) target bundleno = 290 (0x122), region = 96  ;;  %2948 = vmatprep.mubr.msk.bf16.mxu0 (!%p2787_p0), %vm831_vm0, %v3198_v1  ;;  %v816_v3 = vld [vmem:[%s3649_s16 + $0x10] sm:$0xf] (!%p2787_p0)  ;;  %v814_v4 = vld [vmem:[%s3649_s16] sm:$0xff] (!%p2787_p0)  ;;  %vm889_vm1 = vcmask (!%p2787_p0), 519168   ;;  %vm886_vm2 = vcmask (!%p2787_p0), 523264  }
  0x3f   : > { %v815_v8 = vld [vmem:[%s3649_s16 + $0x8] sm:$0xff] (!%p2787_p0) }
  0x41   : > { %s3701_s10 = scalar_lea.vmem %s4296_s6, %s3114_s18 }
  0x43   : > { %v3197_v0 = vld [vmem:[%s4298_s20] sm:$0xff] (!%p2787_p0)  }
  0x44   : > { %2946 = vmatprep.subr.bf16.mxu0 (!%p2787_p0), %v3197_v0 }
  0x45   : > { %2947 = vmatpush3.bf16.msra.mxu0 %v3197_v0 }
  0x48   : > { %2949 = vmatmul.mubr.msk.bf16.vlgmr.msra.gmra.mrb[0].mxu0 %vm831_vm0, %v3199_v2 }
 0x11b   : > { %v2950_v5 = vpop.f32.mrb[0].mxu0 }
 0x11c   : > { %v881_v6 = vadd.f32 %v2950_v5, %v816_v3  ;;  %v872_v7 = vpop.f32.mrb[1].mxu0 }
 0x11d   : > { %v873_v9 = vadd.f32 %v872_v7, %v814_v4  ;;  %v2951_v10 = vpop.f32.mrb[2].mxu0 }
 0x11e   : > { %890 = vst.msk [vmem:[#allocation2 + $0x10] sm:$0xf] %vm889_vm1, %v881_v6  ;;  %v875_v11 = vpop.f32.mrb[3].mxu0 }
 0x11f   : > { %887 = vst.msk [vmem:[#allocation2] sm:$0xff] %vm886_vm2, %v873_v9  ;;  %v876_v12 = vadd.f32 %v875_v11, %v815_v8 }
 0x121   : > { %888 = vst.msk [vmem:[#allocation2 + $0x8] sm:$0xff] %vm886_vm2, %v876_v12 }
 0x122 PF: > { %s4299_s6 = sld [smem:[#allocation19_spill]]  ;;  %v3450_v15 = vmov 0   ;;  %s4300_s16 = sld [smem:[#allocation20_spill]]  ;;  %vm956_vm3 = vcmask 523264   ;;  %v906_v27 = vlaneseq  ;;  %v3451_v32 = vmov 0.0|0.0  }
 0x123   : > { %995 = vmatprep.mubr.bf16.mxu1 %v3450_v15  ;;  %3091 = vmatprep.subr.bf16.mxu0 %v3451_v32  ;;  %s3452_s29 = smov 48   ;;  %s3453_s17 = smov 64   ;;  %vm3454_vm4 = vmmov 0   ;;  %v3455_v47 = vmov 0.0   ;;  %vm1026_vm5 = vcmask 130048   ;;  %vm1163_vm7 = vcmask 1043456  }
 0x124   : > { %v3727_v28 = vshrl.u32 %v906_v27, 7  ;;  %2988 = vmatprep.mubr.msk.f32.mxu0 %vm3454_vm4, %v3455_v47  ;;  %s3456_s30 = smov 112   ;;  %s3457_s18 = smov 32   ;;  %vm3794_vm6 = vmpackc.low %vm1026_vm5, %vm1026_vm5  ;;  %vm1119_vm8 = vcmask 162816   ;;  %vm1126_vm9 = vcmask 158720   ;;  %vm1996_vm10 = vcmask 261120  }
 0x125   : > { %v3720_v25 = vld [vmem:[#allocation2 + $0x10] sm:$0xf]  ;;  %s3458_s0 = smov 16   ;;  %s3459_s21 = smov 96   ;;  %vm2000_vm11 = vcmask 392192   ;;  %vm2110_vm12 = vcmask 519168  }
 0x126   : > { %v891_v22 = vld [vmem:[#allocation2] sm:$0xff]  ;;  %v895_v26 = vpack.c.bf16 %v3720_v25, %v3720_v25  ;;  %v908_v29 = vsub.s32 0, %v3727_v28  ;;  %v912_v31 = vsub.s32 1, %v3727_v28  ;;  %s3460_s23 = smov 80   ;;  %s4303_s1 = sld [smem:[#allocation24_spill]] }
 0x127   : > { %s4307_s25 = scalar_lea.vmem %s4234_s9, %s3635_s27 }
 0x128   : > { %v3250_v13 = vld [vmem:[%s4299_s6 + $0x4] ss:$8 sps:$4 sm:$0xff]   ;;  %v3252_v14 = vld [vmem:[%s4299_s6] ss:$8 sps:$4 sm:$0xff]   ;;  %v3253_v16 = vld [vmem:[%s4299_s6 + $0x14] ss:$8 sps:$4 sm:$0xff]  }
 0x129   : > { %963 = vmatprep.subr.bf16.mxu1 %v3250_v13  ;;  %v3255_v17 = vld [vmem:[%s4299_s6 + $0x10] ss:$8 sps:$4 sm:$0xff]   ;;  %v3256_v18 = vld [vmem:[%s4299_s6 + $0x24] ss:$8 sps:$4 sm:$0xff]   ;;  %v3258_v19 = vld [vmem:[%s4299_s6 + $0x20] ss:$8 sps:$4 sm:$0xff]  }
 0x12a   : > { %964 = vmatpush1.bf16.msra.mxu1 %v3252_v14  ;;  %v3259_v20 = vld [vmem:[%s4299_s6 + $0x34] ss:$8 sps:$4 sm:$0xff]   ;;  %v3261_v21 = vld [vmem:[%s4299_s6 + $0x30] ss:$8 sps:$4 sm:$0xff]   ;;  %v892_v23 = vld [vmem:[#allocation2 + $0x8] sm:$0xff] }
 0x12b   : > { %965 = vmatprep.subr.bf16.mxu1 %v3253_v16  ;;  %v894_v24 = vpack.c.bf16 %v892_v23, %v891_v22  ;;  %v904_v30 = vld [vmem:[%s4300_s16] sm:$0x3] }
 0x12c   : > { %v909_v33 = vrot.slane %v904_v30, %v908_v29  ;;  %v3738_v35 = vrot.slane %v904_v30, %v912_v31  ;;  %s4304_s4 = smov %s4303_s1 }
 0x12d   : > { %v1015_v27 = vld [vmem:[%s4304_s4 + $0x8] sm:$0xff] }
 0x12e   : > { %966 = vmatpush1.bf16.msra.mxu1 %v3255_v17 }
 0x12f   : > { %967 = vmatprep.subr.bf16.mxu1 %v3256_v18 }
 0x132   : > { %968 = vmatpush1.bf16.msra.mxu1 %v3258_v19 }
 0x133   : > { %969 = vmatprep.subr.bf16.mxu1 %v3259_v20  ;;  %v1014_v20 = vld [vmem:[%s4303_s1] sm:$0xff] }
 0x136   : > { %970 = vmatpush1.bf16.msra.mxu1 %v3261_v21 }
 0x137   : > { %3084 = vmatprep.subr.bf16.mxu1 %v3451_v32 }
 0x139   : > { %2801 = vmatmul.mubr.msk.bf16.vlgmr.msra.gmra.mrb[0].mxu1 %vm956_vm3, %v894_v24 }
 0x13a   : > { %1005 = vmatprep.mubr.bf16.mxu1 %v3450_v15 }
 0x141   : > { %2802 = vmatmul.mubr.msk.bf16.gmra.mrb[4].mxu1 %vm956_vm3, %v895_v26 }
 0x142   : > { %2958 = vmatprep.mubr.msk.f32.mxu1 %vm3454_vm4, %v3455_v47 }
 0x20c   : > { %v997_v34 = vpop.f32.mrb[0].mxu1 }
 0x20d   : > { %v999_v36 = vpop.f32.mrb[1].mxu1  ;;  %v3740_v38 = vadd.f32 %v997_v34, %v909_v33 }
 0x20e   : > { %v1001_v37 = vpop.f32.mrb[2].mxu1  ;;  %v3745_v41 = vadd.f32 %v999_v36, %v3738_v35 }
 0x20f   : > { %v3742_v39 = vadd.f32 %v1001_v37, %v909_v33  ;;  %v1003_v40 = vpop.f32.mrb[3].mxu1 }
 0x210   : > { %v3748_v42 = vadd.f32 %v1003_v40, %v3738_v35 }
 0x211   : > { %v3205_v43 = vpack.i.bf16 %v3742_v39, %v3740_v38 }
 0x212   : > { %v3089_v44 = vpack.c.bf16 %v3748_v42, %v3745_v41  ;;  %v3756_v45 = vpack.i.bf16 %v3748_v42, %v3745_v41 }
 0x213   : > { %3206 = vrot.lane.b32.xlu1 %v3205_v43, %s3452_s29  ;;  %3201 = vrot.lane.b32.xlu0 %v3205_v43, %s3453_s17 }
 0x214   : > { %v1007_v46 = vpop.f32.mrb[4].mxu1 }
 0x215   : > { %v3763_v48 = vadd.f32 %v1007_v46, %v909_v33  ;;  %v1009_v49 = vpop.f32.mrb[5].mxu1 }
 0x216   : > { %v1011_v50 = vpop.f32.mrb[6].mxu1  ;;  %v3821_v6 = vadd.f32 %v1009_v49, %v3738_v35 }
 0x217   : > { %1257 = vrot.lane.b32.xlu1 %v3763_v48, %s3452_s29  ;;  %1024 = vrot.lane.b32.xlu0 %v3763_v48, %s3453_s17  ;;  %v1012_v51 = vpop.f32.mrb[7].mxu1 }
 0x21b   : > { %1247 = vrot.lane.b32.xlu1 %v3740_v38, %s3456_s30  ;;  %3211 = vrot.lane.b32.xlu0 %v3205_v43, %s3457_s18 }
 0x21f   : > { %1251 = vrot.lane.b32.xlu1 %v3763_v48, %s3456_s30  ;;  %1249 = vrot.lane.b32.xlu0 %v3742_v39, %s3456_s30 }
 0x223   : > { %3216 = vrot.lane.b32.xlu1 %v3205_v43, %s3458_s0  ;;  %1495 = vrot.lane.b32.xlu0 %v3763_v48, %s3457_s18 }
 0x227   : > { %1487 = vrot.lane.b32.xlu1 %v3742_v39, %s3459_s21  ;;  %1485 = vrot.lane.b32.xlu0 %v3740_v38, %s3459_s21 }
 0x22b   : > { %1731 = vrot.lane.b32.xlu1 %v3763_v48, %s3458_s0  ;;  %1489 = vrot.lane.b32.xlu0 %v3763_v48, %s3459_s21 }
 0x22f   : > { %1723 = vrot.lane.b32.xlu1 %v3742_v39, %s3460_s23  ;;  %1721 = vrot.lane.b32.xlu0 %v3740_v38, %s3460_s23 }
 0x233   : > { %1725 = vrot.lane.b32.xlu0 %v3763_v48, %s3460_s23 }
 0x285   : > { %v3207_v52 = vpop.permute.xlu1 %3206  ;;  %v3202_v53 = vpop.permute.xlu0 %3201 }
 0x286   : > { %v3209_v54 = vunpack.i.h.bf16 %v3207_v52  ;;  %v3208_v55 = vunpack.i.l.bf16 %v3207_v52  ;;  %v3204_v56 = vunpack.i.h.bf16 %v3202_v53  ;;  %v3203_v57 = vunpack.i.l.bf16 %v3202_v53 }
 0x288   : > { %v3092_v59 = vpack.c.bf16 %v3209_v54, %v3208_v55  ;;  %v3085_v60 = vpack.c.bf16 %v3204_v56, %v3203_v57 }
 0x289   : > { %v1258_v61 = vpop.permute.xlu1 %1257  ;;  %v1025_v62 = vpop.permute.xlu0 %1024 }
 0x28a   : > { %3087 = vmatpush3.bf16.xpose.msk.msra.mxu1 %vm3794_vm6, %v3085_v60  ;;  %3094 = vmatpush3.bf16.xpose.msk.msra.mxu0 %vm3794_vm6, %v3092_v59 }
 0x28b   : > { %2986 = vmatprep.subr.mxu0 %v3455_v47  ;;  %2956 = vmatprep.subr.mxu1 %v3455_v47 }
 0x28d   : > { %v1248_v63 = vpop.permute.xlu1 %1247  ;;  %v3212_v0 = vpop.permute.xlu0 %3211 }
 0x28e   : > { %v3214_v1 = vunpack.i.h.bf16 %v3212_v0  ;;  %v3213_v2 = vunpack.i.l.bf16 %v3212_v0 }
 0x290   : > { %v3099_v4 = vpack.c.bf16 %v3214_v1, %v3213_v2 }
 0x291   : > { %v1252_v3 = vpop.permute.xlu1 %1251  ;;  %v1250_v5 = vpop.permute.xlu0 %1249 }
 0x292   : > { %2957 = vmatpush3.xpose.msk.msra.mxu1 %vm1026_vm5, %v1025_v62  ;;  %2987 = vmatpush3.xpose.msk.msra.mxu0 %vm1026_vm5, %v1258_v61 }
 0x293   : > { %3098 = vmatprep.subr.bf16.mxu0 %v3451_v32  ;;  %3088 = vmatprep.subr.bf16.mxu1 %v3451_v32 }
 0x295   : > { %2989 = vmatmul.mubr.msk.f32.vlgmr.msra.gmra.mrb[0].mxu0 %vm1026_vm5, %v1248_v63  ;;  %2959 = vmatmul.mubr.msk.f32.vlgmr.msra.gmra.mrb[8].mxu1 %vm1026_vm5, %v3740_v38  ;;  %v3217_v7 = vpop.permute.xlu1 %3216  ;;  %v1496_v8 = vpop.permute.xlu0 %1495 }
 0x296   : > { %3090 = vmatpush3.bf16.msra.mxu1 %v3089_v44  ;;  %3101 = vmatpush3.bf16.xpose.msk.msra.mxu0 %vm3794_vm6, %v3099_v4  ;;  %v3219_v9 = vunpack.i.h.bf16 %v3217_v7  ;;  %v3218_v10 = vunpack.i.l.bf16 %v3217_v7 }
 0x297   : > { %2961 = vmatprep.mubr.msk.f32.mxu1 %vm3454_vm4, %v3455_v47  ;;  %2991 = vmatprep.mubr.msk.f32.mxu0 %vm3454_vm4, %v3455_v47 }
 0x298   : > { %2971 = vmatprep.subr.mxu1 %v3455_v47  ;;  %3016 = vmatprep.subr.mxu0 %v3455_v47  ;;  %v3106_v11 = vpack.c.bf16 %v3219_v9, %v3218_v10 }
 0x299   : > { %2992 = vmatmul.mubr.msk.f32.gmra.mrb[2].mxu0 %vm1026_vm5, %v1250_v5  ;;  %2962 = vmatmul.mubr.msk.f32.gmra.mrb[10].mxu1 %vm1026_vm5, %v3742_v39  ;;  %v1486_v12 = vpop.permute.xlu0 %1485  ;;  %v1488_v13 = vpop.permute.xlu1 %1487  ;;  %v1016_v39 = vld [vmem:[%s4304_s4 + $0x10] sm:$0xf] }
 0x29a   : > { %2972 = vmatpush3.msk.msra.mxu1 %vm1163_vm7, %v3821_v6  ;;  %2964 = vmatprep.mubr.msk.f32.mxu1 %vm3454_vm4, %v3455_v47 }
 0x29b   : > { %2994 = vmatprep.mubr.msk.f32.mxu0 %vm3454_vm4, %v3455_v47  ;;  %3095 = vmatprep.subr.bf16.mxu1 %v3451_v32 }
 0x29d   : > { %2995 = vmatmul.mubr.msk.f32.gmra.mrb[4].mxu0 %vm1026_vm5, %v1252_v3  ;;  %2965 = vmatmul.mubr.msk.f32.gmra.mrb[12].mxu1 %vm1026_vm5, %v3763_v48  ;;  %v1490_v14 = vpop.permute.xlu0 %1489  ;;  %v1732_v16 = vpop.permute.xlu1 %1731 }
 0x29e   : > { %3017 = vmatpush3.xpose.msk.msra.mxu0 %vm1026_vm5, %v1496_v8  ;;  %3018 = vmatprep.mubr.msk.f32.mxu0 %vm3454_vm4, %v3455_v47 }
 0x29f   : > { %3105 = vmatprep.subr.bf16.mxu0 %v3451_v32  ;;  %2973 = vmatprep.mubr.msk.f32.mxu1 %vm3454_vm4, %v3455_v47 }
 0x2a1   : > { %3019 = vmatmul.mubr.msk.f32.vlgmr.msra.gmra.mrb[6].mxu0 %vm1026_vm5, %v1486_v12  ;;  %v1722_v17 = vpop.permute.xlu0 %1721  ;;  %v1724_v18 = vpop.permute.xlu1 %1723 }
 0x2a2   : > { %3108 = vmatpush3.bf16.xpose.msk.msra.mxu0 %vm3794_vm6, %v3106_v11  ;;  %3021 = vmatprep.mubr.msk.f32.mxu0 %vm3454_vm4, %v3455_v47 }
 0x2a3   : > { %3046 = vmatprep.subr.mxu0 %v3455_v47 }
 0x2a5   : > { %3022 = vmatmul.mubr.msk.f32.gmra.mrb[8].mxu0 %vm1026_vm5, %v1488_v13  ;;  %v1726_v19 = vpop.permute.xlu0 %1725 }
 0x2a6   : > { %3024 = vmatprep.mubr.msk.f32.mxu0 %vm3454_vm4, %v3455_v47 }
 0x2a9   : > { %3025 = vmatmul.mubr.msk.f32.gmra.mrb[10].mxu0 %vm1026_vm5, %v1490_v14 }
 0x2aa   : > { %3047 = vmatpush3.xpose.msk.msra.mxu0 %vm1026_vm5, %v1732_v16  ;;  %3048 = vmatprep.mubr.msk.f32.mxu0 %vm3454_vm4, %v3455_v47 }
 0x2ad   : > { %3049 = vmatmul.mubr.msk.f32.vlgmr.msra.gmra.mrb[12].mxu0 %vm1026_vm5, %v1722_v17 }
 0x2ae   : > { %3051 = vmatprep.mubr.msk.f32.mxu0 %vm3454_vm4, %v3455_v47 }
 0x2b1   : > { %3052 = vmatmul.mubr.msk.f32.gmra.mrb[14].mxu0 %vm1026_vm5, %v1724_v18 }
 0x2b2   : > { %3054 = vmatprep.mubr.msk.f32.mxu0 %vm3454_vm4, %v3455_v47 }
 0x2b5   : > { %3055 = vmatmul.mubr.msk.f32.gmra.mrb[16].mxu0 %vm1026_vm5, %v1726_v19 }
 0x368   : > { %v1105_v21 = vpop.f32.mrb[8].mxu1  ;;  %v1337_v22 = vpop.f32.mrb[0].mxu0 }
 0x369   : > { %v3867_v23 = vadd.f32 %v1105_v21, %v1014_v20  ;;  %v2960_v24 = vpop.f32.mrb[9].mxu1  ;;  %v2990_v26 = vpop.f32.mrb[1].mxu0  ;;  %v3872_v30 = vadd.f32 %v1337_v22, %v1014_v20 }
 0x36b   : > { %v1120_v33 = vsel %vm1119_vm8, %v3867_v23, -inf  ;;  %v1351_v41 = vsel %vm1119_vm8, %v3872_v30, -inf }
 0x36c   : > { %v1342_v34 = vpop.f32.mrb[2].mxu0  ;;  %1121 = vmax.xlane.f32.xlu1 %v1120_v33  ;;  %v1110_v35 = vpop.f32.mrb[10].mxu1 }
 0x36d   : > { %v3876_v36 = vadd.f32 %v1110_v35, %v1015_v27  ;;  %v2963_v37 = vpop.f32.mrb[11].mxu1  ;;  %v2993_v38 = vpop.f32.mrb[3].mxu0  ;;  %v3881_v40 = vadd.f32 %v1342_v34, %v1015_v27 }
 0x36f   : > { %v1123_v42 = vsel %vm1119_vm8, %v3876_v36, -inf  ;;  %v1354_v52 = vsel %vm1119_vm8, %v3881_v40, -inf }
 0x370   : > { %v1347_v43 = vpop.f32.mrb[4].mxu0  ;;  %1352 = vmax.xlane.f32.xlu1 %v1351_v41  ;;  %1124 = vmax.xlane.f32.xlu0 %v1123_v42  ;;  %v1115_v44 = vpop.f32.mrb[12].mxu1 }
 0x371   : > { %v1348_v46 = vadd.f32 %v1347_v43, %v1016_v39  ;;  %v2966_v48 = vpop.f32.mrb[13].mxu1  ;;  %v2996_v49 = vpop.f32.mrb[5].mxu0  ;;  %v3887_v50 = vadd.f32 %v1115_v44, %v1016_v39 }
 0x373   : > { %v1357_v51 = vsel %vm1126_vm9, %v1348_v46, -inf  ;;  %v1127_v56 = vsel %vm1126_vm9, %v3887_v50, -inf }
 0x374   : > { %v1575_v53 = vpop.f32.mrb[6].mxu0  ;;  %1358 = vmax.xlane.f32.xlu1 %v1357_v51  ;;  %1355 = vmax.xlane.f32.xlu0 %v1354_v52 }
 0x375   : > { %v3020_v54 = vpop.f32.mrb[7].mxu0  ;;  %v3892_v55 = vadd.f32 %v1575_v53, %v1014_v20 }
 0x377   : > { %v1589_v61 = vsel %vm1119_vm8, %v3892_v55, -inf }
 0x378   : > { %v1580_v57 = vpop.f32.mrb[8].mxu0  ;;  %1128 = vmax.xlane.f32.xlu0 %v1127_v56 }
 0x379   : > { %v1581_v58 = vadd.f32 %v1580_v57, %v1015_v27  ;;  %v3023_v59 = vpop.f32.mrb[9].mxu0 }
 0x37b   : > { %v1592_v60 = vsel %vm1119_vm8, %v1581_v58, -inf }
 0x37c   : > { %v1585_v62 = vpop.f32.mrb[10].mxu0  ;;  %1593 = vmax.xlane.f32.xlu1 %v1592_v60  ;;  %1590 = vmax.xlane.f32.xlu0 %v1589_v61 }
 0x37d   : > { %v3899_v63 = vadd.f32 %v1585_v62, %v1016_v39  ;;  %v3026_v0 = vpop.f32.mrb[11].mxu0 }
 0x37f   : > { %v1595_v1 = vsel %vm1126_vm9, %v3899_v63, -inf }
 0x380   : > { %v1811_v2 = vpop.f32.mrb[12].mxu0  ;;  %1596 = vmax.xlane.f32.xlu0 %v1595_v1 }
 0x381   : > { %v3903_v3 = vadd.f32 %v1811_v2, %v1014_v20  ;;  %v3050_v4 = vpop.f32.mrb[13].mxu0 }
 0x383   : > { %v1825_v5 = vsel %vm1119_vm8, %v3903_v3, -inf }
 0x384   : > { %v1816_v7 = vpop.f32.mrb[14].mxu0  ;;  %1826 = vmax.xlane.f32.xlu1 %v1825_v5 }
 0x385   : > { %v3907_v8 = vadd.f32 %v1816_v7, %v1015_v27  ;;  %v3053_v9 = vpop.f32.mrb[15].mxu0 }
 0x387   : > { %v1828_v10 = vsel %vm1119_vm8, %v3907_v8, -inf }
 0x388   : > { %v1821_v11 = vpop.f32.mrb[16].mxu0  ;;  %1829 = vmax.xlane.f32.xlu0 %v1828_v10 }
 0x389   : > { %v3911_v12 = vadd.f32 %v1821_v11, %v1016_v39  ;;  %v3056_v13 = vpop.f32.mrb[17].mxu0 }
 0x38b   : > { %v1831_v14 = vsel %vm1126_vm9, %v3911_v12, -inf }
 0x395   : > { %1390 = vrot.lane.b32.xlu1 %v3821_v6, %s3456_s30 }
 0x39e   : > { %3221 = vrot.lane.b32.xlu0 %v3756_v45, %s3456_s30  ;;  %s4305_s30 = scalar_lea.vmem %s4232_s7, %s3635_s27 }
 0x3b9   : > { %1832 = vmax.xlane.f32.xlu1 %v1831_v14 }
 0x3ca   : > { %3226 = vrot.lane.b32.xlu1 %v3756_v45, %s3459_s21 }
 0x3f9   : > { %v1122_v16 = vpop.xlane.xlu1 %1121 }
 0x3fa   : > { %v1130_v17 = vsub.f32 %v3867_v23, %v1122_v16 }
 0x3fc   : > { %v1133_v18 = vmul.f32 1.442695, %v1130_v17 }
 0x3fd   : > { %v1353_v19 = vpop.xlane.xlu1 %1352  ;;  %v1125_v20 = vpop.xlane.xlu0 %1124 }
 0x3fe   : > { %3290 = vpow2.f32 %v1133_v18  ;;  %v1360_v21 = vsub.f32 %v3872_v30, %v1353_v19  ;;  %v1131_v22 = vsub.f32 %v3876_v36, %v1125_v20 }
 0x400   : > { %v1363_v24 = vmul.f32 1.442695, %v1360_v21  ;;  %v1135_v26 = vmul.f32 1.442695, %v1131_v22 }
 0x401   : > { %v1359_v27 = vpop.xlane.xlu1 %1358  ;;  %v1356_v33 = vpop.xlane.xlu0 %1355 }
 0x402   : > { %3292 = vpow2.f32 %v1363_v24  ;;  %v1362_v34 = vsub.f32 %v1348_v46, %v1359_v27  ;;  %v1361_v35 = vsub.f32 %v3881_v40, %v1356_v33 }
 0x403   : > { %3294 = vpow2.f32 %v1135_v26 }
 0x404   : > { %v1367_v37 = vmul.f32 1.442695, %v1362_v34  ;;  %v1365_v38 = vmul.f32 1.442695, %v1361_v35 }
 0x405   : > { %v1129_v23 = vpop.xlane.xlu0 %1128 }
 0x406   : > { %v1132_v39 = vsub.f32 %v3887_v50, %v1129_v23  ;;  %3296 = vpow2.f32 %v1365_v38 }
 0x407   : > { %3298 = vpow2.f32 %v1367_v37 }
 0x408   : > { %v3926_v41 = vpop.eup %3290  ;;  %v1137_v30 = vmul.f32 1.442695, %v1132_v39 }
 0x409   : > { %v1594_v36 = vpop.xlane.xlu1 %1593  ;;  %v1591_v42 = vpop.xlane.xlu0 %1590  ;;  %v1139_v43 = vsel %vm1119_vm8, %v3926_v41, 0.0 }
 0x40a   : > { %3300 = vpow2.f32 %v1137_v30  ;;  %v1599_v44 = vsub.f32 %v1581_v58, %v1594_v36  ;;  %v1598_v40 = vsub.f32 %v3892_v55, %v1591_v42  ;;  %1140 = vadd.xlane.f32.xlu0 %v1139_v43 }
 0x40c   : > { %v3931_v46 = vpop.eup %3292  ;;  %v1603_v48 = vmul.f32 1.442695, %v1599_v44  ;;  %v1601_v49 = vmul.f32 1.442695, %v1598_v40 }
 0x40d   : > { %v1597_v50 = vpop.xlane.xlu0 %1596  ;;  %v1369_v51 = vsel %vm1119_vm8, %v3931_v46, 0.0  ;;  %v3935_v52 = vpop.eup %3294 }
 0x40e   : > { %3302 = vpow2.f32 %v1603_v48  ;;  %v1600_v53 = vsub.f32 %v3899_v63, %v1597_v50  ;;  %1370 = vadd.xlane.f32.xlu1 %v1369_v51  ;;  %v1142_v57 = vsel %vm1119_vm8, %v3935_v52, 0.0 }
 0x40f   : > { %3304 = vpow2.f32 %v1601_v49 }
 0x410   : > { %v1605_v54 = vmul.f32 1.442695, %v1600_v53  ;;  %v3938_v56 = vpop.eup %3296 }
 0x411   : > { %v1827_v55 = vpop.xlane.xlu1 %1826  ;;  %v3942_v58 = vpop.eup %3298  ;;  %v1372_v60 = vsel %vm1119_vm8, %v3938_v56, 0.0 }
 0x412   : > { %3306 = vpow2.f32 %v1605_v54  ;;  %v1834_v59 = vsub.f32 %v3903_v3, %v1827_v55  ;;  %1143 = vadd.xlane.f32.xlu1 %v1142_v57  ;;  %1373 = vadd.xlane.f32.xlu0 %v1372_v60  ;;  %v1375_v63 = vsel %vm1126_vm9, %v3942_v58, 0.0 }
 0x414   : > { %v3947_v61 = vpop.eup %3300  ;;  %v1837_v62 = vmul.f32 1.442695, %v1834_v59 }
 0x415   : > { %v1145_v0 = vsel %vm1126_vm9, %v3947_v61, 0.0  ;;  %v1830_v11 = vpop.xlane.xlu0 %1829  ;;  %v1391_v16 = vpop.permute.xlu1 %1390 }
 0x416   : > { %3308 = vpow2.f32 %v1837_v62  ;;  %1376 = vadd.xlane.f32.xlu1 %v1375_v63  ;;  %1146 = vadd.xlane.f32.xlu0 %v1145_v0  ;;  %v1835_v13 = vsub.f32 %v3907_v8, %v1830_v11 }
 0x418   : > { %v3953_v1 = vpop.eup %3302  ;;  %v1839_v14 = vmul.f32 1.442695, %v1835_v13 }
 0x419   : > { %v3955_v2 = vpop.eup %3304  ;;  %v1610_v3 = vsel %vm1119_vm8, %v3953_v1, 0.0  ;;  %v3222_v8 = vpop.permute.xlu0 %3221 }
 0x41a   : > { %1611 = vadd.xlane.f32.xlu1 %v1610_v3  ;;  %v1607_v4 = vsel %vm1119_vm8, %v3955_v2, 0.0  ;;  %3310 = vpow2.f32 %v1839_v14  ;;  %v3224_v34 = vunpack.i.h.bf16 %v3222_v8  ;;  %v3223_v35 = vunpack.i.l.bf16 %v3222_v8 }
 0x41b   : > { %1608 = vadd.xlane.f32.xlu0 %v1607_v4 }
 0x41c   : > { %v3961_v5 = vpop.eup %3306  ;;  %v3096_v39 = vpack.c.bf16 %v3224_v34, %v3223_v35 }
 0x41d   : > { %v1613_v7 = vsel %vm1126_vm9, %v3961_v5, 0.0 }
 0x41e   : > { %1614 = vadd.xlane.f32.xlu1 %v1613_v7 }
 0x420   : > { %v3965_v9 = vpop.eup %3308 }
 0x421   : > { %v1843_v10 = vsel %vm1119_vm8, %v3965_v9, 0.0 }
 0x422   : > { %1844 = vadd.xlane.f32.xlu1 %v1843_v10 }
 0x424   : > { %v3973_v20 = vpop.eup %3310 }
 0x425   : > { %v1846_v21 = vsel %vm1119_vm8, %v3973_v20, 0.0 }
 0x431   : > { %1626 = vrot.lane.b32.xlu0 %v3821_v6, %s3459_s21 }
 0x446   : > { %v1833_v17 = vpop.xlane.xlu1 %1832 }
 0x447   : > { %v1836_v18 = vsub.f32 %v3911_v12, %v1833_v17 }
 0x449   : > { %v1841_v19 = vmul.f32 1.442695, %v1836_v18 }
 0x44a   : > { %v3227_v12 = vpop.permute.xlu1 %3226 }
 0x44b   : > { %3312 = vpow2.f32 %v1841_v19  ;;  %v3229_v40 = vunpack.i.h.bf16 %v3227_v12  ;;  %v3228_v48 = vunpack.i.l.bf16 %v3227_v12 }
 0x450   : > { %1847 = vadd.xlane.f32.xlu0 %v1846_v21 }
 0x455   : > { %v3977_v22 = vpop.eup %3312 }
 0x456   : > { %v1849_v24 = vsel %vm1126_vm9, %v3977_v22, 0.0 }
 0x457   : > { %1850 = vadd.xlane.f32.xlu1 %v1849_v24 }
 0x466   : > { %1862 = vrot.lane.b32.xlu0 %v3821_v6, %s3460_s23 }
 0x468   : > { %3231 = vrot.lane.b32.xlu1 %v3756_v45, %s3460_s23 }
 0x497   : > { %v1141_v26 = vpop.xlane.xlu0 %1140 }
 0x498   : > { %3314 = vrcp.f32 %v1141_v26 }
 0x49b   : > { %v1371_v27 = vpop.xlane.xlu1 %1370 }
 0x49f   : > { %v1144_v33 = vpop.xlane.xlu1 %1143  ;;  %v1374_v37 = vpop.xlane.xlu0 %1373 }
 0x4a0   : > { %3316 = vrcp.f32 %v1144_v33  ;;  %v3263_v33 = vld [vmem:[%s3661_s26 + $0x8] sm:$0xff]  }
 0x4a2   : > { %v3315_v38 = vpop.eup %3314 }
 0x4a3   : > { %v1151_v23 = vmul.f32 %v3315_v38, %v3926_v41  ;;  %v1147_v30 = vpop.xlane.xlu0 %1146  ;;  %v1377_v41 = vpop.xlane.xlu1 %1376 }
 0x4a4   : > { %3318 = vrcp.f32 %v1147_v30 }
 0x4a5   : > { %2974 = vmatmul.mubr.msk.f32.vlgmr.msra.gmra.mrb[14].mxu1 %vm1119_vm8, %v1151_v23  ;;  %3320 = vrcp.f32 %v1371_v27  ;;  %v3262_v27 = vld [vmem:[%s3661_s26] sm:$0xff]  }
 0x4a6   : > { %3097 = vmatpush3.bf16.msra.mxu1 %v3096_v39  ;;  %2976 = vmatprep.mubr.msk.f32.mxu1 %vm3454_vm4, %v3455_v47  ;;  %3322 = vrcp.f32 %v1374_v37  ;;  %v3264_v37 = vld [vmem:[%s3661_s26 + $0x10] sm:$0xff]  }
 0x4a7   : > { %3001 = vmatprep.subr.mxu1 %v3455_v47  ;;  %3324 = vrcp.f32 %v1377_v41  ;;  %v1612_v49 = vpop.xlane.xlu1 %1611  ;;  %3072 = vmatprep.subr.bf16.mxu0 %v3262_v27  ;;  %v3265_v41 = vld [vmem:[%s3661_s26 + $0x18] sm:$0xff]  }
 0x4a8   : > { %v1609_v42 = vpop.xlane.xlu0 %1608  ;;  %3073 = vmatpush3.bf16.msra.mxu0 %v3262_v27 }
 0x4a9   : > { %3326 = vrcp.f32 %v1609_v42  ;;  %3074 = vmatprep.subr.bf16.mxu0 %v3263_v33 }
 0x4aa   : > { %v3317_v45 = vpop.eup %3316  ;;  %3002 = vmatpush3.msk.msra.mxu1 %vm1163_vm7, %v1391_v16  ;;  %3328 = vrcp.f32 %v1612_v49 }
 0x4ab   : > { %v1152_v6 = vmul.f32 %v3317_v45, %v3935_v52  ;;  %3102 = vmatprep.subr.bf16.mxu1 %v3451_v32  ;;  %v3103_v52 = vpack.c.bf16 %v3229_v40, %v3228_v48  ;;  %v1615_v53 = vpop.xlane.xlu1 %1614 }
 0x4ac   : > { %v1627_v57 = vpop.permute.xlu0 %1626  ;;  %3330 = vrcp.f32 %v1615_v53  ;;  %3075 = vmatpush3.bf16.msra.mxu0 %v3263_v33 }
 0x4ad   : > { %2977 = vmatmul.mubr.msk.f32.gmra.mrb[16].mxu1 %vm1119_vm8, %v1152_v6  ;;  %3076 = vmatprep.subr.bf16.mxu0 %v3264_v37 }
 0x4ae   : > { %2979 = vmatprep.mubr.msk.f32.mxu1 %vm3454_vm4, %v3455_v47  ;;  %v3319_v36 = vpop.eup %3318 }
 0x4af   : > { %v1153_v43 = vmul.f32 %v3319_v36, %v3947_v61  ;;  %v3321_v44 = vpop.eup %3320 }
 0x4b0   : > { %v1381_v50 = vmul.f32 %v3321_v44, %v3931_v46  ;;  %v3323_v51 = vpop.eup %3322  ;;  %3077 = vmatpush3.bf16.msra.mxu0 %v3264_v37 }
 0x4b1   : > { %2980 = vmatmul.mubr.msk.f32.gmra.mrb[18].mxu1 %vm1119_vm8, %v1153_v43  ;;  %v1382_v54 = vmul.f32 %v3323_v51, %v3938_v56  ;;  %v3325_v55 = vpop.eup %3324  ;;  %3078 = vmatprep.subr.bf16.mxu0 %v3265_v41 }
 0x4b2   : > { %3003 = vmatprep.mubr.msk.f32.mxu1 %vm3454_vm4, %v3455_v47  ;;  %v1383_v46 = vmul.f32 %v3325_v55, %v3942_v58  ;;  %v1845_v58 = vpop.xlane.xlu1 %1844 }
 0x4b3   : > { %v3327_v59 = vpop.eup %3326  ;;  %3332 = vrcp.f32 %v1845_v58 }
 0x4b4   : > { %v1619_v56 = vmul.f32 %v3327_v59, %v3955_v2  ;;  %v3329_v60 = vpop.eup %3328  ;;  %3079 = vmatpush3.bf16.msra.mxu0 %v3265_v41 }
 0x4b5   : > { %3004 = vmatmul.mubr.msk.f32.vlgmr.msra.gmra.mrb[20].mxu1 %vm1119_vm8, %v1381_v50  ;;  %v1620_v61 = vmul.f32 %v3329_v60, %v3953_v1  ;;  %2401 = vmatprep.subr.bf16.mxu0 %v3450_v15 }
 0x4b6   : > { %3104 = vmatpush3.bf16.msra.mxu1 %v3103_v52  ;;  %3006 = vmatprep.mubr.msk.f32.mxu1 %vm3454_vm4, %v3455_v47  ;;  %v3331_v62 = vpop.eup %3330 }
 0x4b7   : > { %3031 = vmatprep.subr.mxu1 %v3455_v47 }
 0x4b9   : > { %3007 = vmatmul.mubr.msk.f32.gmra.mrb[22].mxu1 %vm1119_vm8, %v1382_v54 }
 0x4ba   : > { %3032 = vmatpush3.msk.msra.mxu1 %vm1163_vm7, %v1627_v57  ;;  %3009 = vmatprep.mubr.msk.f32.mxu1 %vm3454_vm4, %v3455_v47 }
 0x4bb   : > { %3109 = vmatprep.subr.bf16.mxu1 %v3451_v32  ;;  %v1621_v32 = vmul.f32 %v3331_v62, %v3961_v5 }
 0x4bd   : > { %3010 = vmatmul.mubr.msk.f32.gmra.mrb[24].mxu1 %vm1119_vm8, %v1383_v46  ;;  %v3333_v7 = vpop.eup %3332 }
 0x4be   : > { %3033 = vmatprep.mubr.msk.f32.mxu1 %vm3454_vm4, %v3455_v47  ;;  %v1855_v5 = vmul.f32 %v3333_v7, %v3965_v9 }
 0x4c1   : > { %3034 = vmatmul.mubr.msk.f32.vlgmr.msra.gmra.mrb[26].mxu1 %vm1119_vm8, %v1619_v56 }
 0x4c2   : > { %3036 = vmatprep.mubr.msk.f32.mxu1 %vm3454_vm4, %v3455_v47 }
 0x4c5   : > { %3037 = vmatmul.mubr.msk.f32.gmra.mrb[28].mxu1 %vm1119_vm8, %v1620_v61 }
 0x4c6   : > { %3039 = vmatprep.mubr.msk.f32.mxu1 %vm3454_vm4, %v3455_v47 }
 0x4c9   : > { %3040 = vmatmul.mubr.msk.f32.gmra.mrb[30].mxu1 %vm1119_vm8, %v1621_v32 }
 0x4ca   : > { %3063 = vmatprep.mubr.msk.f32.mxu1 %vm3454_vm4, %v3455_v47 }
 0x4dd   : > { %v1848_v63 = vpop.xlane.xlu0 %1847 }
 0x4de   : > { %3334 = vrcp.f32 %v1848_v63 }
 0x4e1   : > { %v1863_v10 = vpop.permute.xlu0 %1862 }
 0x4e4   : > { %v1851_v0 = vpop.xlane.xlu1 %1850 }
 0x4e5   : > { %3336 = vrcp.f32 %v1851_v0 }
 0x4e8   : > { %v3232_v2 = vpop.permute.xlu1 %3231  ;;  %v3335_v11 = vpop.eup %3334 }
 0x4e9   : > { %v3234_v1 = vunpack.i.h.bf16 %v3232_v2  ;;  %v3233_v3 = vunpack.i.l.bf16 %v3232_v2  ;;  %v1856_v13 = vmul.f32 %v3335_v11, %v3973_v20 }
 0x4eb   : > { %v3110_v4 = vpack.c.bf16 %v3234_v1, %v3233_v3 }
 0x4ed   : > { %3111 = vmatpush3.bf16.msra.mxu1 %v3110_v4 }
 0x4ee   : > { %3061 = vmatprep.subr.mxu1 %v3455_v47 }
 0x4ef   : > { %v3337_v14 = vpop.eup %3336 }
 0x4f0   : > { %v1857_v16 = vmul.f32 %v3337_v14, %v3977_v22 }
 0x4f1   : > { %3062 = vmatpush3.msk.msra.mxu1 %vm1163_vm7, %v1863_v10  ;;  %v2843_v10 = vld [vmem:[%s4305_s30] ss:$0 sm:$0xff] }
 0x4f2   : > { %3064 = vmatmul.mubr.msk.f32.vlgmr.msra.gmra.mrb[32].mxu1 %vm1119_vm8, %v1855_v5 }
 0x4f3   : > { %3066 = vmatprep.mubr.msk.f32.mxu1 %vm3454_vm4, %v3455_v47 }
 0x4f6   : > { %3067 = vmatmul.mubr.msk.f32.gmra.mrb[34].mxu1 %vm1119_vm8, %v1856_v13 }
 0x4f7   : > { %3069 = vmatprep.mubr.msk.f32.mxu1 %vm3454_vm4, %v3455_v47 }
 0x4fa   : > { %3070 = vmatmul.mubr.msk.f32.gmra.mrb[36].mxu1 %vm1119_vm8, %v1857_v16 }
 0x4fb   : > { %2263 = vmatprep.mubr.bf16.mxu1 %v3450_v15 }
 0x578   : > { %v1233_v9 = vpop.f32.mrb[14].mxu1 }
 0x579   : > { %v2975_v17 = vpop.f32.mrb[15].mxu1 }
 0x580   : > { %v1238_v18 = vpop.f32.mrb[16].mxu1 }
 0x581   : > { %v2978_v19 = vpop.f32.mrb[17].mxu1 }
 0x582   : > { %v3350_v19 = vld [vmem:[#allocation2] sm:$0xff] }
 0x584   : > { %v1243_v21 = vpop.f32.mrb[18].mxu1 }
 0x585   : > { %v2981_v20 = vpop.f32.mrb[19].mxu1 }
 0x588   : > { %v1471_v24 = vpop.f32.mrb[20].mxu1 }
 0x589   : > { %v3005_v8 = vpop.f32.mrb[21].mxu1 }
 0x58c   : > { %v1476_v12 = vpop.f32.mrb[22].mxu1 }
 0x58d   : > { %v3235_v26 = vpack.i.bf16 %v1476_v12, %v1471_v24  ;;  %v3008_v47 = vpop.f32.mrb[23].mxu1  ;;  %v3351_v24 = vld [vmem:[#allocation2 + $0x8] sm:$0xff] }
 0x58f   : > { %3236 = vrot.lane.b32.xlu0 %v3235_v26, %s3458_s0 }
 0x590   : > { %v1481_v22 = vpop.f32.mrb[24].mxu1 }
 0x591   : > { %v3011_v34 = vpop.f32.mrb[25].mxu1 }
 0x593   : > { %1964 = vrot.lane.b32.xlu0 %v1481_v22, %s3458_s0  ;;  %s4306_s0 = scalar_lea.vmem %s4233_s8, %s3635_s27 }
 0x594   : > { %v1707_v35 = vpop.f32.mrb[26].mxu1 }
 0x595   : > { %v3035_v38 = vpop.f32.mrb[27].mxu1 }
 0x598   : > { %v1712_v23 = vpop.f32.mrb[28].mxu1 }
 0x599   : > { %v3240_v39 = vpack.i.bf16 %v1712_v23, %v1707_v35  ;;  %v3038_v30 = vpop.f32.mrb[29].mxu1 }
 0x59b   : > { %3241 = vrot.lane.b32.xlu1 %v3240_v39, %s3457_s18 }
 0x59c   : > { %v1717_v45 = vpop.f32.mrb[30].mxu1 }
 0x59d   : > { %1976 = vrot.lane.b32.xlu0 %v1717_v45, %s3457_s18  ;;  %v3041_v6 = vpop.f32.mrb[31].mxu1 }
 0x5c5   : > { %v1943_v36 = vpop.f32.mrb[32].mxu1 }
 0x5c6   : > { %v3065_v42 = vpop.f32.mrb[33].mxu1 }
 0x5c7   : > { %v3268_v42 = vld [vmem:[%s3678_s12 + $0x4] ss:$8 sps:$4 sm:$0xff]  }
 0x5c8   : > { %2231 = vmatprep.subr.bf16.mxu1 %v3268_v42 }
 0x5c9   : > { %v1948_v43 = vpop.f32.mrb[34].mxu1 }
 0x5ca   : > { %v3245_v44 = vpack.i.bf16 %v1948_v43, %v1943_v36  ;;  %v3068_v40 = vpop.f32.mrb[35].mxu1  ;;  %v3266_v43 = vld [vmem:[%s3678_s12] ss:$8 sps:$4 sm:$0xff]  }
 0x5cb   : > { %2232 = vmatpush1.bf16.msra.mxu1 %v3266_v43  ;;  %v3269_v40 = vld [vmem:[%s3678_s12 + $0x10] ss:$8 sps:$4 sm:$0xff]  }
 0x5cc   : > { %3246 = vrot.lane.b32.xlu1 %v3245_v44, %s3452_s29  ;;  %v3271_v44 = vld [vmem:[%s3678_s12 + $0x14] ss:$8 sps:$4 sm:$0xff]  }
 0x5cd   : > { %v1953_v48 = vpop.f32.mrb[36].mxu1  ;;  %2233 = vmatprep.subr.bf16.mxu1 %v3271_v44 }
 0x5ce   : > { %1988 = vrot.lane.b32.xlu0 %v1953_v48, %s3452_s29  ;;  %v3071_v49 = vpop.f32.mrb[37].mxu1  ;;  %v3274_v48 = vld [vmem:[%s3678_s12 + $0x24] ss:$8 sps:$4 sm:$0xff]  }
 0x5cf   : > { %2234 = vmatpush1.bf16.msra.mxu1 %v3269_v40  ;;  %v3272_v49 = vld [vmem:[%s3678_s12 + $0x20] ss:$8 sps:$4 sm:$0xff]  }
 0x5d0   : > { %2235 = vmatprep.subr.bf16.mxu1 %v3274_v48 }
 0x5d3   : > { %2236 = vmatpush1.bf16.msra.mxu1 %v3272_v49 }
 0x601   : > { %v3237_v50 = vpop.permute.xlu0 %3236 }
 0x602   : > { %v3239_v53 = vunpack.i.h.bf16 %v3237_v50  ;;  %v3238_v54 = vunpack.i.l.bf16 %v3237_v50  ;;  %v3275_v50 = vld [vmem:[%s3678_s12 + $0x30] ss:$8 sps:$4 sm:$0xff]  }
 0x604   : > { %v1994_v59 = vsel %vm1026_vm5, %v1238_v18, %v3239_v53  ;;  %v1993_v60 = vsel %vm1026_vm5, %v1233_v9, %v3238_v54  ;;  %v3279_v53 = vld [vmem:[%s3701_s10 + $0x8] sm:$0xff]   ;;  %v3280_v54 = vld [vmem:[%s3701_s10 + $0x10] sm:$0xff]  }
 0x605   : > { %v1965_v51 = vpop.permute.xlu0 %1964 }
 0x606   : > { %v1995_v61 = vsel %vm1026_vm5, %v1243_v21, %v1965_v51  ;;  %v3277_v51 = vld [vmem:[%s3678_s12 + $0x34] ss:$8 sps:$4 sm:$0xff]  }
 0x607   : > { %2237 = vmatprep.subr.bf16.mxu1 %v3277_v51 }
 0x608   : > { %2238 = vmatpush1.bf16.msra.mxu1 %v3275_v50 }
 0x60d   : > { %v3242_v52 = vpop.permute.xlu1 %3241 }
 0x60e   : > { %v3244_v55 = vunpack.i.h.bf16 %v3242_v52  ;;  %v3243_v57 = vunpack.i.l.bf16 %v3242_v52  ;;  %v3278_v52 = vld [vmem:[%s3701_s10] sm:$0xff]  }
 0x60f   : > { %v1977_v46 = vpop.permute.xlu0 %1976 }
 0x610   : > { %v1997_v58 = vsel %vm1996_vm10, %v1993_v60, %v3243_v57  ;;  %v1998_v63 = vsel %vm1996_vm10, %v1994_v59, %v3244_v55  ;;  %v1999_v0 = vsel %vm1996_vm10, %v1995_v61, %v1977_v46  ;;  %v3281_v55 = vld [vmem:[%s3701_s10 + $0x18] sm:$0xff]   ;;  %v3282_v57 = vld [vmem:[%s3701_s10 + $0x20] sm:$0xff]   ;;  %v3283_v46 = vld [vmem:[%s3701_s10 + $0x28] sm:$0xff]  }
 0x611   : > { %v3284_v59 = vld [vmem:[%s3701_s10 + $0x30] sm:$0xff]   ;;  %v3286_v60 = vld [vmem:[%s3701_s10 + $0x40] sm:$0xff]  }
 0x63e   : > { %v3247_v56 = vpop.permute.xlu1 %3246 }
 0x63f   : > { %v3249_v62 = vunpack.i.h.bf16 %v3247_v56  ;;  %v3248_v32 = vunpack.i.l.bf16 %v3247_v56  ;;  %v3285_v56 = vld [vmem:[%s3701_s10 + $0x38] sm:$0xff]  }
 0x640   : > { %v1989_v2 = vpop.permute.xlu0 %1988 }
 0x641   : > { %v2001_v1 = vsel %vm2000_vm11, %v1997_v58, %v3248_v32  ;;  %v2002_v3 = vsel %vm2000_vm11, %v1998_v63, %v3249_v62  ;;  %v2003_v4 = vsel %vm2000_vm11, %v1999_v0, %v1989_v2 }
 0x642   : > { %v2004_v7 = vpack.c.bf16 %v2002_v3, %v2001_v1  ;;  %v2005_v5 = vpack.c.bf16 %v2003_v4, %v2003_v4 }
 0x644   : > { %3080 = vmatprep.mubr.msk.bf16.mxu0 %vm956_vm3, %v2004_v7  ;;  %v2850_v7 = vld [vmem:[%s4306_s0] ss:$0 sm:$0xff] }
 0x645   : > { %3081 = vmatmul.mubr.msk.bf16.vlgmr.msra.gmra.mrb[20].mxu0 %vm956_vm3, %v2005_v5 }
 0x646   : > { %2402 = vmatpush1.bf16.msra.mxu0 %v3278_v52  ;;  %v2862_v52 = vld [vmem:[%s797_s28] ss:$0 sm:$0xff] }
 0x647   : > { %2403 = vmatprep.subr.bf16.mxu0 %v3450_v15 }
 0x64a   : > { %2404 = vmatpush1.bf16.msra.mxu0 %v3279_v53 }
 0x64b   : > { %2405 = vmatprep.subr.bf16.mxu0 %v3450_v15 }
 0x64e   : > { %2406 = vmatpush1.bf16.msra.mxu0 %v3280_v54 }
 0x64f   : > { %2407 = vmatprep.subr.bf16.mxu0 %v3450_v15 }
 0x652   : > { %2408 = vmatpush1.bf16.msra.mxu0 %v3281_v55 }
 0x653   : > { %2409 = vmatprep.subr.bf16.mxu0 %v3450_v15 }
 0x656   : > { %2410 = vmatpush1.bf16.msra.mxu0 %v3282_v57 }
 0x657   : > { %2411 = vmatprep.subr.bf16.mxu0 %v3450_v15 }
 0x65a   : > { %2412 = vmatpush1.bf16.msra.mxu0 %v3283_v46 }
 0x65b   : > { %2413 = vmatprep.subr.bf16.mxu0 %v3450_v15 }
 0x65e   : > { %2414 = vmatpush1.bf16.msra.mxu0 %v3284_v59 }
 0x65f   : > { %2415 = vmatprep.subr.bf16.mxu0 %v3450_v15 }
 0x662   : > { %2416 = vmatpush1.bf16.msra.mxu0 %v3285_v56 }
 0x663   : > { %2417 = vmatprep.subr.bf16.mxu0 %v3450_v15 }
 0x666   : > { %2418 = vmatpush1.bf16.msra.mxu0 %v3286_v60 }
 0x667   : > { %2419 = vmatprep.subr.bf16.mxu0 %v3450_v15 }
 0x718   : > { %v3082_v11 = vpop.f32.mrb[20].mxu0 }
 0x719   : > { %v2085_v13 = vpop.f32.mrb[21].mxu0  ;;  %v2094_v17 = vadd.f32 %v3082_v11, %v2843_v10 }
 0x71a   : > { %v2086_v14 = vadd.f32 %v2843_v10, %v2085_v13  ;;  %v3083_v16 = vpop.f32.mrb[22].mxu0 }
 0x71b   : > { %v2088_v9 = vpop.f32.mrb[23].mxu0  ;;  %v2101_v26 = vadd.f32 %v2094_v17, %v3720_v25 }
 0x71c   : > { %v2089_v18 = vadd.f32 %v2843_v10, %v2088_v9  ;;  %v2099_v21 = vadd.f32 %v3350_v19, %v2086_v14  ;;  %v2851_v14 = vld [vmem:[%s4307_s25] ss:$0 sm:$0xff] }
 0x71d   : > { %v2111_v47 = vsel %vm2110_vm12, %v2101_v26, 0.0 }
 0x71e   : > { %v2104_v20 = vsel %vm956_vm3, %v2099_v21, 0.0  ;;  %v2100_v8 = vadd.f32 %v3351_v24, %v2089_v18 }
 0x71f   : > { %2105 = vadd.xlane.f32.xlu1 %v2104_v20 }
 0x720   : > { %v2107_v12 = vsel %vm956_vm3, %v2100_v8, 0.0 }
 0x721   : > { %2108 = vadd.xlane.f32.xlu0 %v2107_v12  ;;  %v3287_v12 = vld [vmem:[%s3701_s10 + $0x48] sm:$0xff]  }
 0x722   : > { %2420 = vmatpush1.bf16.msra.mxu0 %v3287_v12 }
 0x723   : > { %2421 = vmatprep.subr.bf16.mxu0 %v3450_v15 }
 0x725   : > { %2112 = vadd.xlane.f32.xlu0 %v2111_v47  ;;  %v3289_v47 = vld [vmem:[%s3701_s10 + $0x58] sm:$0xff]  }
 0x7ac   : > { %v2106_v22 = vpop.xlane.xlu1 %2105 }
 0x7ad   : > { %v2115_v27 = vmul.f32 0.015625, %v2106_v22  ;;  %v2173_v22 = vld [vmem:[%s3683_s22] sm:$0x3] }
 0x7ae   : > { %v2109_v33 = vpop.xlane.xlu0 %2108 }
 0x7af   : > { %v4065_v34 = vsub.f32 %v2099_v21, %v2115_v27  ;;  %v2116_v35 = vmul.f32 0.015625, %v2109_v33  ;;  %v2178_v27 = vrot.slane %v2173_v22, %v908_v29  ;;  %v2182_v33 = vrot.slane %v2173_v22, %v912_v31 }
 0x7b1   : > { %v4067_v37 = vsub.f32 %v2100_v8, %v2116_v35  ;;  %v2121_v38 = vmul.f32 %v4065_v34, %v4065_v34 }
 0x7b2   : > { %v2113_v25 = vpop.xlane.xlu0 %2112 }
 0x7b3   : > { %v2117_v23 = vmul.f32 0.015625, %v2113_v25  ;;  %v2124_v39 = vsel %vm956_vm3, %v2121_v38, 0.0  ;;  %v2122_v30 = vmul.f32 %v4067_v37, %v4067_v37 }
 0x7b4   : > { %2125 = vadd.xlane.f32.xlu1 %v2124_v39 }
 0x7b5   : > { %v4074_v45 = vsub.f32 %v2101_v26, %v2117_v23  ;;  %v2127_v6 = vsel %vm956_vm3, %v2122_v30, 0.0  ;;  %v3288_v26 = vld [vmem:[%s3701_s10 + $0x50] sm:$0xff]  }
 0x7b6   : > { %2128 = vadd.xlane.f32.xlu0 %v2127_v6  ;;  %2422 = vmatpush1.bf16.msra.mxu0 %v3288_v26 }
 0x7b7   : > { %v2123_v41 = vmul.f32 %v4074_v45, %v4074_v45  ;;  %2423 = vmatprep.subr.bf16.mxu0 %v3450_v15 }
 0x7b9   : > { %v2130_v36 = vsel %vm2110_vm12, %v2123_v41, 0.0 }
 0x7ba   : > { %2131 = vadd.xlane.f32.xlu1 %v2130_v36  ;;  %2424 = vmatpush1.bf16.msra.mxu0 %v3289_v47 }
 0x841   : > { %v2126_v61 = vpop.xlane.xlu1 %2125 }
 0x842   : > { %v2133_v62 = vmul.f32 0.015625, %v2126_v61 }
 0x843   : > { %v2129_v32 = vpop.xlane.xlu0 %2128 }
 0x844   : > { %v2136_v58 = vadd.f32 1e-05, %v2133_v62  ;;  %v2134_v63 = vmul.f32 0.015625, %v2129_v32 }
 0x846   : > { %3338 = vrsqrt.f32 %v2136_v58  ;;  %v2137_v0 = vadd.f32 1e-05, %v2134_v63 }
 0x847   : > { %v2132_v2 = vpop.xlane.xlu1 %2131 }
 0x848   : > { %3340 = vrsqrt.f32 %v2137_v0  ;;  %v2135_v1 = vmul.f32 0.015625, %v2132_v2 }
 0x84a   : > { %v2138_v3 = vadd.f32 1e-05, %v2135_v1 }
 0x84c   : > { %3342 = vrsqrt.f32 %v2138_v3 }
 0x850   : > { %v3339_v4 = vpop.eup %3338 }
 0x851   : > { %v2142_v5 = vmul.f32 %v3339_v4, %v4065_v34 }
 0x852   : > { %v3341_v10 = vpop.eup %3340 }
 0x853   : > { %v2151_v11 = vmul.f32 %v2850_v7, %v2142_v5  ;;  %v2143_v13 = vmul.f32 %v3341_v10, %v4067_v37 }
 0x855   : > { %v2152_v16 = vmul.f32 %v2850_v7, %v2143_v13  ;;  %v2160_v17 = vadd.f32 %v2851_v14, %v2151_v11 }
 0x856   : > { %v3343_v9 = vpop.eup %3342 }
 0x857   : > { %v2161_v18 = vadd.f32 %v2851_v14, %v2152_v16  ;;  %v2144_v19 = vmul.f32 %v3343_v9, %v4074_v45 }
 0x859   : > { %v2163_v21 = vpack.c.bf16 %v2161_v18, %v2160_v17  ;;  %v2153_v20 = vmul.f32 %v2850_v7, %v2144_v19 }
 0x85b   : > { %2860 = vmatmul.mubr.msk.bf16.vlgmr.msra.gmra.mrb[40].mxu1 %vm956_vm3, %v2163_v21  ;;  %v2162_v24 = vadd.f32 %v2851_v14, %v2153_v20 }
 0x85c   : > { %2273 = vmatprep.mubr.bf16.mxu1 %v3450_v15 }
 0x85d   : > { %v2164_v8 = vpack.c.bf16 %v2162_v24, %v2162_v24 }
 0x863   : > { %2861 = vmatmul.mubr.msk.bf16.gmra.mrb[44].mxu1 %vm956_vm3, %v2164_v8 }
 0x92e   : > { %v2265_v34 = vpop.f32.mrb[40].mxu1 }
 0x92f   : > { %v2266_v35 = vadd.f32 %v2265_v34, %v2178_v27  ;;  %v2267_v37 = vpop.f32.mrb[41].mxu1 }
 0x930   : > { %v2268_v38 = vadd.f32 %v2267_v37, %v2182_v33  ;;  %v2269_v25 = vpop.f32.mrb[42].mxu1 }
 0x931   : > { %v2270_v23 = vadd.f32 %v2269_v25, %v2178_v27  ;;  %v2271_v39 = vpop.f32.mrb[43].mxu1  ;;  %v2282_v45 = vmax.f32 %v2266_v35, 0.0 }
 0x932   : > { %v2272_v30 = vadd.f32 %v2271_v39, %v2182_v33  ;;  %v2283_v15 = vmax.f32 %v2268_v38, 0.0  ;;  %v2877_v38 = vld [vmem:[%s800_s24] ss:$0 sm:$0xff]  ;;  %s4308_s24 = sld [smem:[#allocation9_spill]] }
 0x933   : > { %v2284_v6 = vmax.f32 %v2270_v23, 0.0  ;;  %v2878_v39 = vld [vmem:[%s803_s5] ss:$0 sm:$0xff] }
 0x934   : > { %v2285_v41 = vmax.f32 %v2272_v30, 0.0 }
 0x935   : > { %v2288_v36 = vpack.c.bf16 %v2284_v6, %v2282_v45 }
 0x936   : > { %v2289_v42 = vpack.c.bf16 %v2285_v41, %v2283_v15  ;;  %v2275_v43 = vpop.f32.mrb[44].mxu1 }
 0x937   : > { %v2276_v29 = vadd.f32 %v2275_v43, %v2178_v27  ;;  %v2277_v44 = vpop.f32.mrb[45].mxu1 }
 0x938   : > { %v2278_v28 = vadd.f32 %v2277_v44, %v2182_v33  ;;  %v2279_v31 = vpop.f32.mrb[46].mxu1  ;;  %2875 = vmatprep.mubr.msk.bf16.mxu0 %vm956_vm3, %v2289_v42  ;;  %p2879_p1 = scmp.ne.s32.totalorder %s4308_s24, 2 }
 0x939   : > { %v2280_v40 = vpop.f32.mrb[47].mxu1  ;;  %2434 = vmatmul.mubr.bf16.vlgmr.msra.gmra.mrb[24].mxu0 %v2288_v36  ;;  %v2286_v49 = vmax.f32 %v2276_v29, 0.0  ;;  %s4309_s6 = sld [smem:[#allocation30_spill]] (!%p2879_p1)  ;;  %s4310_s26 = sld [smem:[#allocation31_spill]] (!%p2879_p1) }
 0x93a   : > { %v2287_v48 = vmax.f32 %v2278_v28, 0.0 }
 0x93b   : > { %v2290_v51 = vpack.c.bf16 %v2286_v49, %v2286_v49 }
 0x93c   : > { %v2291_v50 = vpack.c.bf16 %v2287_v48, %v2287_v48 }
 0x93e   : > { %2876 = vmatprep.mubr.msk.bf16.mxu0 %vm956_vm3, %v2291_v50 }
 0x941   : > { %2442 = vmatmul.mubr.bf16.gmra.mrb[28].mxu0 %v2290_v51 }
 0xa0c   : > { %v2435_v53 = vpop.f32.mrb[24].mxu0 }
 0xa0d   : > { %v2436_v54 = vadd.f32 %v2862_v52, %v2435_v53  ;;  %v2437_v55 = vpop.f32.mrb[25].mxu0 }
 0xa0e   : > { %v2438_v57 = vpop.f32.mrb[26].mxu0 }
 0xa0f   : > { %v2439_v46 = vadd.f32 %v2862_v52, %v2438_v57  ;;  %v2440_v59 = vpop.f32.mrb[27].mxu0  ;;  %v2449_v56 = vadd.f32 %v2436_v54, %v2160_v17  ;;  %v2880_v54 = vld [vmem:[%s4309_s6] ss:$0 sm:$0xff] (!%p2879_p1) }
 0xa10   : > { %v2881_v57 = vld [vmem:[%s4310_s26] ss:$0 sm:$0xff] (!%p2879_p1) }
 0xa11   : > { %v2454_v60 = vsel %vm956_vm3, %v2449_v56, 0.0  ;;  %v2450_v61 = vadd.f32 %v2439_v46, %v2161_v18 }
 0xa12   : > { %2455 = vadd.xlane.f32.xlu0 %v2454_v60 }
 0xa13   : > { %v2457_v62 = vsel %vm956_vm3, %v2450_v61, 0.0 }
 0xa14   : > { %v2443_v32 = vpop.f32.mrb[28].mxu0  ;;  %2458 = vadd.xlane.f32.xlu1 %v2457_v62 }
 0xa15   : > { %v2444_v58 = vadd.f32 %v2862_v52, %v2443_v32  ;;  %v2445_v63 = vpop.f32.mrb[29].mxu0 }
 0xa16   : > { %v2446_v0 = vpop.f32.mrb[30].mxu0 }
 0xa17   : > { %v2447_v2 = vpop.f32.mrb[31].mxu0  ;;  %v2451_v1 = vadd.f32 %v2444_v58, %v2162_v24 }
 0xa19   : > { %v2460_v3 = vsel %vm2110_vm12, %v2451_v1, 0.0 }
 0xa1a   : > { %2461 = vadd.xlane.f32.xlu0 %v2460_v3 }
 0xa9f   : > { %v2456_v4 = vpop.xlane.xlu0 %2455 }
 0xaa0   : > { %v2463_v7 = vmul.f32 0.015625, %v2456_v4 }
 0xaa1   : > { %v2459_v5 = vpop.xlane.xlu1 %2458 }
 0xaa2   : > { %v2466_v10 = vsub.f32 %v2449_v56, %v2463_v7  ;;  %v2464_v11 = vmul.f32 0.015625, %v2459_v5 }
 0xaa4   : > { %v2467_v13 = vsub.f32 %v2450_v61, %v2464_v11  ;;  %v2469_v14 = vmul.f32 %v2466_v10, %v2466_v10 }
 0xaa6   : > { %v2472_v16 = vsel %vm956_vm3, %v2469_v14, 0.0  ;;  %v2470_v9 = vmul.f32 %v2467_v13, %v2467_v13 }
 0xaa7   : > { %2473 = vadd.xlane.f32.xlu1 %v2472_v16  ;;  %v2462_v17 = vpop.xlane.xlu0 %2461 }
 0xaa8   : > { %v2465_v18 = vmul.f32 0.015625, %v2462_v17  ;;  %v2475_v19 = vsel %vm956_vm3, %v2470_v9, 0.0 }
 0xaa9   : > { %2476 = vadd.xlane.f32.xlu0 %v2475_v19 }
 0xaaa   : > { %v2468_v21 = vsub.f32 %v2451_v1, %v2465_v18 }
 0xaac   : > { %v2471_v20 = vmul.f32 %v2468_v21, %v2468_v21 }
 0xaae   : > { %v2478_v24 = vsel %vm2110_vm12, %v2471_v20, 0.0 }
 0xaaf   : > { %2479 = vadd.xlane.f32.xlu1 %v2478_v24 }
 0xb34   : > { %v2474_v8 = vpop.xlane.xlu1 %2473 }
 0xb35   : > { %v2481_v12 = vmul.f32 0.015625, %v2474_v8 }
 0xb36   : > { %v2477_v26 = vpop.xlane.xlu0 %2476 }
 0xb37   : > { %v2484_v47 = vadd.f32 1e-05, %v2481_v12  ;;  %v2482_v22 = vmul.f32 0.015625, %v2477_v26 }
 0xb39   : > { %3344 = vrsqrt.f32 %v2484_v47  ;;  %v2485_v27 = vadd.f32 1e-05, %v2482_v22 }
 0xb3b   : > { %3346 = vrsqrt.f32 %v2485_v27 }
 0xb3c   : > { %v2480_v33 = vpop.xlane.xlu1 %2479 }
 0xb3d   : > { %v2483_v34 = vmul.f32 0.015625, %v2480_v33 }
 0xb3f   : > { %v2486_v35 = vadd.f32 1e-05, %v2483_v34 }
 0xb41   : > { %3348 = vrsqrt.f32 %v2486_v35 }
 0xb43   : > { %v3345_v37 = vpop.eup %3344 }
 0xb44   : > { %v2490_v25 = vmul.f32 %v3345_v37, %v2466_v10 }
 0xb45   : > { %v3347_v23 = vpop.eup %3346 }
 0xb46   : > { %v2499_v30 = vmul.f32 %v2877_v38, %v2490_v25  ;;  %v2491_v45 = vmul.f32 %v3347_v23, %v2467_v13 }
 0xb48   : > { %v2508_v6 = vadd.f32 %v2878_v39, %v2499_v30  ;;  %v2500_v15 = vmul.f32 %v2877_v38, %v2491_v45 }
 0xb4a   : > { %2511 = vst.msk [vmem:[#allocation2] sm:$0xff] %vm956_vm3, %v2508_v6  ;;  %v2509_v41 = vadd.f32 %v2878_v39, %v2500_v15  ;;  %v2520_v44 = vsel (!%p2879_p1), %vm2110_vm12, %v2508_v6, 0.0 }
 0xb4b   : > { %v3349_v36 = vpop.eup %3348  ;;  %2521 = vadd.xlane.f32.xlu0 (!%p2879_p1), %v2520_v44 }
 0xb4c   : > { %2512 = vst.msk [vmem:[#allocation2 + $0x8] sm:$0xff] %vm956_vm3, %v2509_v41  ;;  %v2492_v42 = vmul.f32 %v3349_v36, %v2468_v21  ;;  %2517 = sbr.rel (%p2879_p1) target bundleno = 3204 (0xc84), region = 100 }
 0xb4e   : > { %v2501_v43 = vmul.f32 %v2877_v38, %v2492_v42 }
 0xb50   : > { %v2510_v29 = vadd.f32 %v2878_v39, %v2501_v43 }
 0xb52   : > { %2513 = vst.msk [vmem:[#allocation2 + $0x10] sm:$0xf] %vm2110_vm12, %v2510_v29 }
 0xbd8   : > { %v2522_v28 = vpop.xlane.xlu0 %2521 }
 0xbd9   : > { %v2523_v31 = vmul.f32 0.015625, %v2522_v28 }
 0xbdb   : > { %v2524_v40 = vsub.f32 %v2508_v6, %v2523_v31 }
 0xbdd   : > { %v2525_v48 = vmul.f32 %v2524_v40, %v2524_v40 }
 0xbdf   : > { %v2526_v49 = vsel %vm2110_vm12, %v2525_v48, 0.0 }
 0xbe0   : > { %2527 = vadd.xlane.f32.xlu0 %v2526_v49 }
 0xc6d   : > { %v2528_v50 = vpop.xlane.xlu0 %2527 }
 0xc6e   : > { %v2529_v51 = vmul.f32 0.015625, %v2528_v50 }
 0xc70   : > { %v2530_v52 = vadd.f32 1e-05, %v2529_v51 }
 0xc72   : > { %3352 = vrsqrt.f32 %v2530_v52 }
 0xc7c   : > { %v3353_v53 = vpop.eup %3352 }
 0xc7d   : > { %v2532_v55 = vmul.f32 %v3353_v53, %v2524_v40 }
 0xc7f   : > { %v2539_v46 = vmul.f32 %v2880_v54, %v2532_v55 }
 0xc81   : > { %v2546_v59 = vadd.f32 %v2881_v57, %v2539_v46 }
 0xc83   : > { %2547 = vst.msk [vmem:[%s747_s3] sm:$0xf] %vm2110_vm12, %v2546_v59 }
 0xc84 PF: > { %s4311_s29 = sld [smem:[#allocation10_spill]]  ;;  %s4312_s30 = sld [smem:[#allocation7_spill]] }
 0xc85   : > { %s4314_s23 = sld [smem:[#allocation32_spill]]  ;;  %s2562_s10 = sshll.u32 %s747_s3, 4  ;;  %s2563_s10 = int_to_ptr.vmem [resolvable:$true] %s2562_s10 }
 0xc86   : > { %s3354_s2 = scalar_lea.vmem %s2563_s10, 64  ;;  %s3461_s1 = smov [#allocation3]  }
 0xc87   : > { %p3355_p2 = scmp.ne.s32.totalorder %s2563_s10, %s3354_s2  ;;  %s3358_s20 = sshll.u32 %s3461_s1, 4  ;;  %s3359_s20 = int_to_ptr.vmem [resolvable:$false] %s3358_s20 }
 0xc88   : > { %s3360_s24 = scalar_lea.vmem %s3359_s20, 128  ;;  %p3361_p6 = scmp.lt.s32.totalorder %s2563_s10, %s3359_s20 }
 0xc89   : > { %p3356_p4 = pnand %p3355_p2, %p3606_p3  ;;  %p3362_p7 = scmp.lt.s32.totalorder %s3360_s24, %s3354_s2 }
 0xc8a   : > { %s2883_s18 = sshll.u32 %s4311_s29, 6  ;;  %s4315_s22 = sand.u32 1, %s4312_s30  }
 0xc8b   : > { %s4174_s25 = scalar_lea.hbm %s4314_s23, %s2883_s18  ;;  %s2549_s28 = scalar_lea.sflag [#allocation4], %s4315_s22 }
 0xc8c   : > { %p3357_p5 = pneg %p3356_p4  ;;  %p3363_p8 = por %p3362_p7, %p3361_p6 }
 0xc8e   : > { %p3364_p10 = pnand %p3363_p8, %p3357_p5 }
 0xc90   : > { %3367 = shalt.err (!%p3364_p10)
}
 0xc91   : > { %s3368_s19 = scalar_lea.hbm %s4174_s25, 64  ;;  %s3372_s5 = scalar_lea.hbm %s4314_s23, 128 }
 0xc92   : > { %p3369_p11 = scmp.ne.s32.totalorder %s4174_s25, %s3368_s19  ;;  %p3373_p0 = scmp.lt.u32.totalorder %s4174_s25, %s4314_s23 }
 0xc93   : > { %p3374_p1 = scmp.lt.u32.totalorder %s3372_s5, %s3368_s19  ;;  %p3376_p4 = scmp.lt.u32.totalorder %s3368_s19, %s4174_s25 }
 0xc94   : > { %p3370_p12 = pnand %p3369_p11, %p3606_p3 }
 0xc95   : > { %p3375_p2 = por %p3374_p1, %p3373_p0 }
 0xc96   : > { %p3371_p13 = pneg %p3370_p12 }
 0xc97   : > { %p3377_p5 = por %p3376_p4, %p3375_p2 }
 0xc99   : > { %p3378_p6 = pnand %p3377_p5, %p3371_p13 }
 0xc9b   : > { %3381 = shalt.err (!%p3378_p6)
}
 0xc9c   : > { %3115 = dma.vmem_to_hbm [thread:$0]  (%p3606_p3), %s2563_s10, 64, %s4174_s25, %s2549_s28  }
 0xc9d PF: > { %s4316_s17 = sld [smem:[#allocation13_spill]]  ;;  %s4317_s26 = sld [smem:[#allocation6_spill]] }
 0xca3   : > { %p3121_p7 = scmp.ge.s32.totalorder %s4316_s17, 2  ;;  %s2574_s30 = sand.u32 1, %s4317_s26  }
 0xca4   : > { %s2575_s18 = scalar_lea.sflag [#allocation4], %s2574_s30 }
 0xca5   : > { %p3118_p8 = pnand %p3121_p7, %p3616_p9 }
 0xca7   : > { %3415 = dma.done.wait (!%p3118_p8), %s2575_s18, 64  }
 0xca8   : > { %3417 = vsyncadd (!%p3118_p8), %s2575_s18, 4294967232  ;;  %s31_s20 = sadd.s32 1, %s4316_s17   ;;  %s4319_s27 = sld [smem:[#allocation7_spill]] }
 0xca9   : > { %p28_p10 = scmp.ge.s32.totalorder %s31_s20, 8   ;;  %s4320_s28 = sld [smem:[#allocation8_spill]] }
 0xcaa   : > { %s4321_s29 = sld [smem:[#allocation18_spill]]  ;;  %s4322_s30 = sld [smem:[#allocation11_spill]] }
 0xcab   : > { %s4323_s0 = sld [smem:[#allocation12_spill]]  ;;  %s4324_s19 = sld [smem:[#allocation14_spill]] }
 0xcac   : > { %s4325_s1 = sld [smem:[#allocation16_spill]]  ;;  %30 = sbr.rel (!%p28_p10) target bundleno = 18 (0x12), region = 174 }
 0xcb3   :  { %2580 = vsyncpa [#allocation4], 1 }
 0xcb4   :  { %2582 = vsyncpa [#allocation4 + $0x1], 1 }

</bundles_post_ra>
